<compile_context>
chip_gen: v5e
topology: v5e:2x2
jax: 0.10.0
libtpu: 0.0.40
codegen_flags: <defaults>
</compile_context>

<pallas_src>
import functools

import jax
import jax.numpy as jnp
from jax.experimental import pallas as pl
from jax.experimental.pallas import tpu as pltpu


def _cdiv(a, b):
    return -(-a // b)


def _round_up(x, m):
    return _cdiv(x, m) * m


def _split_dim(dim, tile_max, gran, min_blocks=1):
    """Split `dim` into nblk equal tiles (multiple of `gran`, <= tile_max).

    Returns (tile, padded_dim, nblk) with padded_dim = nblk * tile >= dim.
    Padding is at most ~gran per block instead of a full tile.
    """
    tile_max = max(gran, _round_up(tile_max, gran))
    nblk = max(min_blocks, _cdiv(_round_up(dim, gran), tile_max))
    tile = _round_up(_cdiv(dim, nblk), gran)
    return tile, nblk * tile, nblk


def _default_min_parallel_blocks():
    # v7x has 2 TensorCores per chip; make sure both get >=1 parallel block.
    try:
        dev = jax.devices()[0]
        if dev.platform == "tpu" and "v7" in str(getattr(dev, "device_kind", "")).lower():
            return 2
    except Exception:
        pass
    return 1


# ----------------------------- kernels ------------------------------------ #
# f32 output: accumulate directly into the VMEM-resident output block
# (its block index is constant over k), no scratch, no finalize copy.

def _mm_out_kernel(x_ref, w_ref, o_ref):
    @pl.when(pl.program_id(2) == 0)
    def _():
        o_ref[...] = jnp.zeros_like(o_ref)

    o_ref[...] += jnp.dot(x_ref[...], w_ref[...], preferred_element_type=jnp.float32)


def _mm_bias_out_kernel(x_ref, w_ref, b_ref, o_ref):
    @pl.when(pl.program_id(2) == 0)
    def _():
        # Bias added exactly once per output tile (at init).
        o_ref[...] = jnp.broadcast_to(b_ref[...], o_ref.shape)

    o_ref[...] += jnp.dot(x_ref[...], w_ref[...], preferred_element_type=jnp.float32)


# Non-f32 (e.g. bf16) output: f32 scratch accumulator, single cast+store.

def _mm_acc_kernel(x_ref, w_ref, o_ref, acc_ref):
    k = pl.program_id(2)

    @pl.when(k == 0)
    def _():
        acc_ref[...] = jnp.zeros_like(acc_ref)

    acc_ref[...] += jnp.dot(x_ref[...], w_ref[...], preferred_element_type=jnp.float32)

    @pl.when(k == pl.num_programs(2) - 1)
    def _():
        o_ref[...] = acc_ref[...].astype(o_ref.dtype)


def _mm_bias_acc_kernel(x_ref, w_ref, b_ref, o_ref, acc_ref):
    k = pl.program_id(2)

    @pl.when(k == 0)
    def _():
        acc_ref[...] = jnp.zeros_like(acc_ref)

    acc_ref[...] += jnp.dot(x_ref[...], w_ref[...], preferred_element_type=jnp.float32)

    @pl.when(k == pl.num_programs(2) - 1)
    def _():
        o_ref[...] = (acc_ref[...] + b_ref[...]).astype(o_ref.dtype)


# ----------------------------- wrappers ------------------------------------ #

def prepare_dense_weight(w, *, transpose=False):
    """One-time weight prep, hoisted out of the per-call path.

    Optionally transposes PyTorch's [out, in] layout to [in, out], casts to
    bf16 and pads both dims to multiples of 128.  When using a pre-padded
    weight, pass `dim_output=<true N>` to dense_linear.
    """
    w = jnp.asarray(w)
    if transpose:
        w = w.T
    K, N = w.shape
    Kp, Np = _round_up(K, 128), _round_up(N, 128)
    w = w.astype(jnp.bfloat16)
    if (Kp, Np) != (K, N):
        w = jnp.pad(w, ((0, Kp - K), (0, Np - N)))
    return w


@functools.partial(
    jax.jit,
    static_argnames=(
        "use_bias", "dim_output", "tm", "tn", "tk",
        "min_pallas_elems", "min_parallel_blocks",
    ),
)
def dense_linear(
    x,
    w,
    b=None,
    *,
    use_bias=True,
    dim_output=None,
    tm=1024,          # tile upper bounds; actual tiles evenly divide padded dims
    tn=1024,
    tk=2048,
    min_pallas_elems=1 << 20,
    min_parallel_blocks=None,
):
    """y = x @ w (+ b).  x: [M, K]; w: [K, N] (or pre-padded bf16 from
    prepare_dense_weight, in which case pass dim_output); b: [N] or None."""
    M, K = x.shape
    Kw, Nw = w.shape
    N = Nw if dim_output is None else dim_output
    assert K <= Kw and Kw - K < 128, "weight K must match x (or be pre-padded to 128)"
    assert N <= Nw and Nw - N < 128, "dim_output must match weight N (or its 128-pad)"
    out_dtype = x.dtype
    out_itemsize = jnp.dtype(out_dtype).itemsize

    if use_bias:
        assert b is not None, "use_bias=True requires a bias array"
        b = jnp.asarray(b, jnp.float32).reshape(1, -1)
        assert b.shape[1] == N

    # Tiny layers: launch + per-grid-step overhead dwarfs the matmul.
    # (Computed in f32, unlike the bf16-fed Pallas path — documented difference.)
    if M * K * N < min_pallas_elems:
        y = jnp.dot(x, w[:K, :N].astype(jnp.float32),
                    preferred_element_type=jnp.float32)
        if use_bias:
            y = y + b
        return y.astype(out_dtype)

    if min_parallel_blocks is None:
        min_parallel_blocks = _default_min_parallel_blocks()

    # bf16 operands feed the MXU (2x throughput, half the HBM/VMEM traffic);
    # accumulation stays f32.  Pre-cast weights skip the cast entirely.
    xc = x.astype(jnp.bfloat16)
    wc = w if w.dtype == jnp.bfloat16 else w.astype(jnp.bfloat16)

    # Tile selection: pad only to layout granularity (16 x 128); the chosen
    # tiles evenly divide the padded dims.  tm covers the whole rounded batch
    # whenever it fits, so the [K,N] weight is streamed from HBM once.
    tm_, Mp, nbm = _split_dim(M, tm, 16)
    tk_, Kp, nbk = _split_dim(Kw, tk, 128)
    tn_, Np, nbn = _split_dim(N, tn, 128)

    # v7x: guarantee >= min_parallel_blocks parallel grid blocks (split M).
    if nbm * nbn < min_parallel_blocks and _round_up(M, 16) >= 16 * min_parallel_blocks:
        tm_, Mp, nbm = _split_dim(M, tm, 16, min_blocks=_cdiv(min_parallel_blocks, nbn))

    if (Mp, Kp) != (M, K):
        xc = jnp.pad(xc, ((0, Mp - M), (0, Kp - K)))
    if (Kp, Np) != (Kw, Nw):
        wc = jnp.pad(wc, ((0, Kp - Kw), (0, Np - Nw)))
    if use_bias and Np != N:
        b = jnp.pad(b, ((0, 0), (0, Np - N)))

    grid = (nbm, nbn, nbk)
    x_spec = pl.BlockSpec((tm_, tk_), lambda i, j, k: (i, k))
    w_spec = pl.BlockSpec((tk_, tn_), lambda i, j, k: (k, j))
    o_spec = pl.BlockSpec((tm_, tn_), lambda i, j, k: (i, j))

    direct_out = out_dtype == jnp.float32

    # VMEM footprint: double-buffered bf16 inputs + output (+ f32 scratch).
    vmem_need = 2 * 2 * (tm_ * tk_ + tk_ * tn_) + 2 * tm_ * tn_ * out_itemsize
    if not direct_out:
        vmem_need += tm_ * tn_ * 4
    vmem_limit = int(min(max(vmem_need + (8 << 20), 32 << 20), 48 << 20))

    compiler_params = pltpu.CompilerParams(
        dimension_semantics=("parallel", "parallel", "arbitrary"),
        vmem_limit_bytes=vmem_limit,
    )
    cost = pl.CostEstimate(
        flops=2 * Mp * Kp * Np,
        bytes_accessed=2 * (Mp * Kp + Kp * Np) + Mp * Np * out_itemsize,
        transcendentals=0,
    )
    out_shape = jax.ShapeDtypeStruct((Mp, Np), out_dtype)

    if use_bias:
        b_spec = pl.BlockSpec((1, tn_), lambda i, j, k: (0, j))
        if direct_out:
            kernel, in_specs, scratch = _mm_bias_out_kernel, [x_spec, w_spec, b_spec], []
        else:
            kernel, in_specs = _mm_bias_acc_kernel, [x_spec, w_spec, b_spec]
            scratch = [pltpu.VMEM((tm_, tn_), jnp.float32)]
        operands = (xc, wc, b)
    else:
        if direct_out:
            kernel, in_specs, scratch = _mm_out_kernel, [x_spec, w_spec], []
        else:
            kernel, in_specs = _mm_acc_kernel, [x_spec, w_spec]
            scratch = [pltpu.VMEM((tm_, tn_), jnp.float32)]
        operands = (xc, wc)

    y = pl.pallas_call(
        kernel,
        out_shape=out_shape,
        grid=grid,
        in_specs=in_specs,
        out_specs=o_spec,
        scratch_shapes=scratch,
        compiler_params=compiler_params,
        cost_estimate=cost,
    )(*operands)

    if (Mp, Np) != (M, N):
        y = y[:M, :N]
    return y


if __name__ == "__main__":
    # TODO(synk): spectral_norm=True path (power iteration over the weight) is
    # not implemented in-kernel; only spectral_norm=False is covered.

    key = jax.random.PRNGKey(0)
    kx, kw, kb = jax.random.split(key, 3)

    # --- 1) DenseLinear(dim_input=640, dim_output=384, layer_norm=False) ---
    # Dims are 128-multiples -> no padding, single K block, weight read once.
    batch, dim_input, dim_output = 96, 640, 384
    x = jax.random.normal(kx, (batch, dim_input), dtype=jnp.float32)
    bound = 1.0 / jnp.sqrt(jnp.float32(dim_input))
    w = jax.random.uniform(kw, (dim_input, dim_output), minval=-bound, maxval=bound,
                           dtype=jnp.float32)
    b = jax.random.uniform(kb, (dim_output,), minval=-bound, maxval=bound,
                           dtype=jnp.float32)

    y = jax.block_until_ready(dense_linear(x, w, b, use_bias=True))
    assert y.shape == (batch, dim_output) and y.dtype == jnp.float32

    xb = x.astype(jnp.bfloat16).astype(jnp.float32)
    wb = w.astype(jnp.bfloat16).astype(jnp.float32)
    y_ref = xb @ wb + b[None, :]
    assert jnp.allclose(y, y_ref, atol=2e-3, rtol=2e-3), "bias-path mismatch"

    # --- 2) layer_norm=True case: nn.Linear(bias=False). ---
    y_nb = jax.block_until_ready(dense_linear(x, w, use_bias=False))
    assert jnp.allclose(y_nb, xb @ wb, atol=2e-3, rtol=2e-3), "no-bias mismatch"

    # --- 3) Pre-cast/pre-padded weight + non-128 dims + forced M/N/K tiling ---
    batch2, k2, n2 = 200, 600, 300
    x2 = jax.random.normal(kx, (batch2, k2), dtype=jnp.float32)
    w2 = jax.random.uniform(kw, (k2, n2), minval=-0.05, maxval=0.05, dtype=jnp.float32)
    b2 = jax.random.uniform(kb, (n2,), minval=-0.05, maxval=0.05, dtype=jnp.float32)
    w2p = prepare_dense_weight(w2)           # bf16, padded to (640, 384)
    y2 = jax.block_until_ready(
        dense_linear(x2, w2p, b2, use_bias=True, dim_output=n2,
                     tm=64, tn=128, tk=256, min_pallas_elems=0,
                     min_parallel_blocks=1))
    x2b = x2.astype(jnp.bfloat16).astype(jnp.float32)
    w2b = w2p[:k2, :n2].astype(jnp.float32)
    y2_ref = x2b @ w2b + b2[None, :]
    assert y2.shape == (batch2, n2)
    assert jnp.allclose(y2, y2_ref, atol=2e-3, rtol=2e-3), "padded-path mismatch"

    # --- 4) bf16 activations/output (scratch-accumulator path). ---
    x3 = jax.random.normal(kx, (128, 512), dtype=jnp.bfloat16)
    w3 = jax.random.uniform(kw, (512, 256), minval=-0.06, maxval=0.06, dtype=jnp.float32)
    b3 = jax.random.uniform(kb, (256,), minval=-0.06, maxval=0.06, dtype=jnp.float32)
    y3 = jax.block_until_ready(dense_linear(x3, w3, b3, use_bias=True,
                                            min_pallas_elems=0))
    assert y3.dtype == jnp.bfloat16
    y3_ref = x3.astype(jnp.float32) @ w3.astype(jnp.bfloat16).astype(jnp.float32) + b3
    assert jnp.allclose(y3.astype(jnp.float32), y3_ref, atol=5e-2, rtol=5e-2)

    # --- 5) Tiny-layer fallback (jnp.dot, no pallas_call overhead). ---
    xs = jax.random.normal(kx, (8, 32), dtype=jnp.float32)
    ws = jax.random.uniform(kw, (32, 64), minval=-0.2, maxval=0.2, dtype=jnp.float32)
    bs = jax.random.uniform(kb, (64,), minval=-0.2, maxval=0.2, dtype=jnp.float32)
    ys = jax.block_until_ready(dense_linear(xs, ws, bs, use_bias=True))
    assert jnp.allclose(ys, xs @ ws + bs[None, :], atol=1e-5, rtol=1e-5)

    print("KERNEL_OK")
</pallas_src>

<mosaic_0001>
module attributes {stable_mosaic.version = 11 : i64} {
  func.func @_mm_bias_out_kernel(%arg0: i32, %arg1: i32, %arg2: i32, %arg3: memref<96x640xbf16, #tpu.memory_space<vmem>>, %arg4: memref<640x384xbf16, #tpu.memory_space<vmem>>, %arg5: memref<1x384xf32, #tpu.memory_space<vmem>>, %arg6: memref<96x384xf32, #tpu.memory_space<vmem>>) attributes {dimension_semantics = [#tpu.dimension_semantics<parallel>, #tpu.dimension_semantics<parallel>, #tpu.dimension_semantics<arbitrary>], iteration_bounds = array<i64: 1, 1, 1>, scalar_prefetch = 0 : i64, scratch_operands = 0 : i64, tpu.core_type = #tpu.core_type<tc>, window_params = [{transform_indices = @transform_0, window_bounds = array<i64: 96, 640>}, {transform_indices = @transform_1, window_bounds = array<i64: 640, 384>}, {transform_indices = @transform_2, window_bounds = array<i64: 1, 384>}, {transform_indices = @transform_3, window_bounds = array<i64: 96, 384>}]} {
    %c0_i32 = arith.constant 0 : i32
    %0 = arith.cmpi eq, %arg2, %c0_i32 : i32
    %1 = arith.extui %0 : i1 to i32
    %c0_i32_0 = arith.constant 0 : i32
    %2 = arith.cmpi ne, %1, %c0_i32_0 : i32
    scf.if %2 {
      %c0_8 = arith.constant 0 : index
      %c0_9 = arith.constant 0 : index
      %9 = vector.load %arg5[%c0_8, %c0_9] : memref<1x384xf32, #tpu.memory_space<vmem>>, vector<1x384xf32>
      %10 = vector.shape_cast %9 : vector<1x384xf32> to vector<1x384xf32>
      %11 = vector.broadcast %10 : vector<1x384xf32> to vector<96x384xf32>
      %c0_10 = arith.constant 0 : index
      %c0_11 = arith.constant 0 : index
      %12 = vector.load %arg6[%c0_10, %c0_11] : memref<96x384xf32, #tpu.memory_space<vmem>>, vector<96x384xf32>
      tpu.vector_store %arg6[%c0_10, %c0_11], %11 {strides = array<i32>} : memref<96x384xf32, #tpu.memory_space<vmem>>, vector<96x384xf32>,
    } else {
    }
    %c0 = arith.constant 0 : index
    %c0_1 = arith.constant 0 : index
    %3 = vector.load %arg6[%c0, %c0_1] : memref<96x384xf32, #tpu.memory_space<vmem>>, vector<96x384xf32>
    %c0_2 = arith.constant 0 : index
    %c0_3 = arith.constant 0 : index
    %4 = vector.load %arg3[%c0_2, %c0_3] : memref<96x640xbf16, #tpu.memory_space<vmem>>, vector<96x640xbf16>
    %c0_4 = arith.constant 0 : index
    %c0_5 = arith.constant 0 : index
    %5 = vector.load %arg4[%c0_4, %c0_5] : memref<640x384xbf16, #tpu.memory_space<vmem>>, vector<640x384xbf16>
    %cst = arith.constant dense<0.000000e+00> : vector<96x384xf32>
    %6 = tpu.matmul %4, %5, %cst {dimension_numbers = #tpu.dot_dimension_numbers<[1], [0], [0], [1], [0, 0, 1, 1], [], []>} : vector<96x640xbf16>, vector<640x384xbf16>, vector<96x384xf32> -> vector<96x384xf32>
    %7 = arith.addf %3, %6 : vector<96x384xf32>
    %c0_6 = arith.constant 0 : index
    %c0_7 = arith.constant 0 : index
    %8 = vector.load %arg6[%c0_6, %c0_7] : memref<96x384xf32, #tpu.memory_space<vmem>>, vector<96x384xf32>
    tpu.vector_store %arg6[%c0_6, %c0_7], %7 {strides = array<i32>} : memref<96x384xf32, #tpu.memory_space<vmem>>, vector<96x384xf32>,
    return
  }
  func.func @transform_0(%arg0: i32, %arg1: i32, %arg2: i32) -> (i32, i32) {
    %c0_i32 = arith.constant 0 : i32
    return %arg0, %arg2 : i32, i32
  }
  func.func @transform_1(%arg0: i32, %arg1: i32, %arg2: i32) -> (i32, i32) {
    %c0_i32 = arith.constant 0 : i32
    return %arg2, %arg1 : i32, i32
  }
  func.func @transform_2(%arg0: i32, %arg1: i32, %arg2: i32) -> (i32, i32) {
    %c0_i32 = arith.constant 0 : i32
    %c0_i32_0 = arith.constant 0 : i32
    return %c0_i32, %arg1 : i32, i32
  }
  func.func @transform_3(%arg0: i32, %arg1: i32, %arg2: i32) -> (i32, i32) {
    %c0_i32 = arith.constant 0 : i32
    return %arg0, %arg1 : i32, i32
  }
}

</mosaic_0001>

<bundles_post_ra>
// kernel: dense_linear.1
= control target key start
LH: loop header
LB: loop body
LE: loop exit
PB: predicated region body
PF: predicated region fallthrough
CT: control target
= control target key end

     0   :  { %s3969_s0 = inlined_call_operand.vmem [shape: bf16[96,640], index: 0, kind: input, shape index: {}]   ;;  %s3970_s1 = inlined_call_operand.vmem [shape: bf16[640,384], index: 1, kind: input, shape index: {}]   ;;  %s3971_s2 = inlined_call_operand.vmem [shape: f32[1,384], index: 2, kind: input, shape index: {}]   ;;  %s3972_s3 = inlined_call_operand.hbm [shape: f32[96,384], index: 3, kind: output, shape index: {}]  }
   0x1   :  { %v1972_v0 = vld [vmem:[%s3970_s1 + $0xa8] sm:$0xf]  ;;  %v2418_v1 = vld [vmem:[%s3970_s1 + $0xb0] sm:$0xf0]  ;;  %v1960_v9 = vld [vmem:[%s3970_s1 + $0x90] sm:$0xf] }
   0x2   :  { %v2068_v2 = vld [vmem:[%s3970_s1 + $0x168] sm:$0xf]  ;;  %v1973_v3 = vor.u32 %v2418_v1, %v1972_v0  ;;  %v2442_v4 = vld [vmem:[%s3970_s1 + $0x170] sm:$0xf0]  ;;  %v2415_v10 = vld [vmem:[%s3970_s1 + $0x98] sm:$0xf0] }
   0x3   :  { %v2164_v5 = vld [vmem:[%s3970_s1 + $0x228] sm:$0xf]  ;;  %v2466_v6 = vld [vmem:[%s3970_s1 + $0x230] sm:$0xf0]  ;;  %v2069_v7 = vor.u32 %v2442_v4, %v2068_v2  ;;  %v2056_v11 = vld [vmem:[%s3970_s1 + $0x150] sm:$0xf]  ;;  %v1961_v12 = vor.u32 %v2415_v10, %v1960_v9 }
   0x4   :  { %v2165_v8 = vor.u32 %v2466_v6, %v2164_v5  ;;  %1091 = vmatpush.bf16.msra.mxu0 %v1973_v3  ;;  %2516 = vmatpush.bf16.msra.mxu3 %v1973_v3  ;;  %v2439_v13 = vld [vmem:[%s3970_s1 + $0x158] sm:$0xf0]  ;;  %v2152_v14 = vld [vmem:[%s3970_s1 + $0x210] sm:$0xf]  ;;  %v1948_v18 = vld [vmem:[%s3970_s1 + $0x78] sm:$0xf] }
   0x5   :  { %v2463_v15 = vld [vmem:[%s3970_s1 + $0x218] sm:$0xf0]  ;;  %1130 = vmatpush.bf16.msra.mxu1 %v2069_v7  ;;  %v2057_v16 = vor.u32 %v2439_v13, %v2056_v11  ;;  %v2412_v19 = vld [vmem:[%s3970_s1 + $0x80] sm:$0xf0]  ;;  %v2044_v20 = vld [vmem:[%s3970_s1 + $0x138] sm:$0xf] }
   0x6   :  { %1169 = vmatpush.bf16.msra.mxu2 %v2165_v8  ;;  %v2153_v17 = vor.u32 %v2463_v15, %v2152_v14  ;;  %v2436_v21 = vld [vmem:[%s3970_s1 + $0x140] sm:$0xf0]  ;;  %v2140_v22 = vld [vmem:[%s3970_s1 + $0x1f8] sm:$0xf]  ;;  %v1949_v24 = vor.u32 %v2412_v19, %v1948_v18  ;;  %v1936_v27 = vld [vmem:[%s3970_s1 + $0x60] sm:$0xf] }
   0x7   :  { %v2460_v23 = vld [vmem:[%s3970_s1 + $0x200] sm:$0xf0]  ;;  %v2045_v25 = vor.u32 %v2436_v21, %v2044_v20  ;;  %v2409_v28 = vld [vmem:[%s3970_s1 + $0x68] sm:$0xf0]  ;;  %v2032_v29 = vld [vmem:[%s3970_s1 + $0x120] sm:$0xf] }
   0x8   :  { %1092 = vmatpush.bf16.msra.mxu0 %v1961_v12  ;;  %2517 = vmatpush.bf16.msra.mxu3 %v1961_v12  ;;  %v2141_v26 = vor.u32 %v2460_v23, %v2140_v22  ;;  %v2433_v30 = vld [vmem:[%s3970_s1 + $0x128] sm:$0xf0]  ;;  %v2128_v31 = vld [vmem:[%s3970_s1 + $0x1e0] sm:$0xf]  ;;  %v1937_v33 = vor.u32 %v2409_v28, %v1936_v27  ;;  %v1924_v36 = vld [vmem:[%s3970_s1 + $0x48] sm:$0xf] }
   0x9   :  { %1131 = vmatpush.bf16.msra.mxu1 %v2057_v16  ;;  %v2457_v32 = vld [vmem:[%s3970_s1 + $0x1e8] sm:$0xf0]  ;;  %v2033_v34 = vor.u32 %v2433_v30, %v2032_v29  ;;  %v2406_v37 = vld [vmem:[%s3970_s1 + $0x50] sm:$0xf0]  ;;  %v2020_v38 = vld [vmem:[%s3970_s1 + $0x108] sm:$0xf] }
   0xa   :  { %1170 = vmatpush.bf16.msra.mxu2 %v2153_v17  ;;  %v2129_v35 = vor.u32 %v2457_v32, %v2128_v31  ;;  %v2430_v39 = vld [vmem:[%s3970_s1 + $0x110] sm:$0xf0]  ;;  %v2116_v40 = vld [vmem:[%s3970_s1 + $0x1c8] sm:$0xf]  ;;  %v1925_v42 = vor.u32 %v2406_v37, %v1924_v36  ;;  %v1912_v45 = vld [vmem:[%s3970_s1 + $0x30] sm:$0xf] }
   0xb   :  { %v2454_v41 = vld [vmem:[%s3970_s1 + $0x1d0] sm:$0xf0]  ;;  %v2021_v43 = vor.u32 %v2430_v39, %v2020_v38  ;;  %v2403_v46 = vld [vmem:[%s3970_s1 + $0x38] sm:$0xf0]  ;;  %v2008_v47 = vld [vmem:[%s3970_s1 + $0xf0] sm:$0xf] }
   0xc   :  { %1093 = vmatpush.bf16.msra.mxu0 %v1949_v24  ;;  %2518 = vmatpush.bf16.msra.mxu3 %v1949_v24  ;;  %v2117_v44 = vor.u32 %v2454_v41, %v2116_v40  ;;  %v2427_v48 = vld [vmem:[%s3970_s1 + $0xf8] sm:$0xf0]  ;;  %v2104_v49 = vld [vmem:[%s3970_s1 + $0x1b0] sm:$0xf]  ;;  %v1913_v51 = vor.u32 %v2403_v46, %v1912_v45  ;;  %v1900_v54 = vld [vmem:[%s3970_s1 + $0x18] sm:$0xf] }
   0xd   :  { %1132 = vmatpush.bf16.msra.mxu1 %v2045_v25  ;;  %v2451_v50 = vld [vmem:[%s3970_s1 + $0x1b8] sm:$0xf0]  ;;  %v2009_v52 = vor.u32 %v2427_v48, %v2008_v47  ;;  %v2400_v55 = vld [vmem:[%s3970_s1 + $0x20] sm:$0xf0]  ;;  %v1996_v56 = vld [vmem:[%s3970_s1 + $0xd8] sm:$0xf] }
   0xe   :  { %1171 = vmatpush.bf16.msra.mxu2 %v2141_v26  ;;  %v2105_v53 = vor.u32 %v2451_v50, %v2104_v49  ;;  %v2424_v57 = vld [vmem:[%s3970_s1 + $0xe0] sm:$0xf0]  ;;  %v2092_v58 = vld [vmem:[%s3970_s1 + $0x198] sm:$0xf]  ;;  %v1901_v60 = vor.u32 %v2400_v55, %v1900_v54  ;;  %v1888_v61 = vld [vmem:[%s3970_s1] sm:$0xf] }
   0xf   :  { %v2448_v59 = vld [vmem:[%s3970_s1 + $0x1a0] sm:$0xf0]  ;;  %v2397_v62 = vld [vmem:[%s3970_s1 + $0x8] sm:$0xf0]  ;;  %v1984_v63 = vld [vmem:[%s3970_s1 + $0xc0] sm:$0xf]  ;;  %v1997_v0 = vor.u32 %v2424_v57, %v1996_v56 }
  0x10   :  { %1094 = vmatpush.bf16.msra.mxu0 %v1937_v33  ;;  %2519 = vmatpush.bf16.msra.mxu3 %v1937_v33  ;;  %v2093_v1 = vor.u32 %v2448_v59, %v2092_v58  ;;  %v2421_v2 = vld [vmem:[%s3970_s1 + $0xc8] sm:$0xf0]  ;;  %v2080_v3 = vld [vmem:[%s3970_s1 + $0x180] sm:$0xf]  ;;  %v2368_v6 = vld [vmem:[%s3969_s0 + $0x10] sm:$0xf0]  ;;  %v1889_v13 = vor.u32 %v2397_v62, %v1888_v61 }
  0x11   :  { %1133 = vmatpush.bf16.msra.mxu1 %v2033_v34  ;;  %v2445_v4 = vld [vmem:[%s3970_s1 + $0x188] sm:$0xf0]  ;;  %v1768_v5 = vld [vmem:[%s3969_s0] sm:$0xf]  ;;  %v1808_v7 = vld [vmem:[%s3969_s0 + $0x50] sm:$0xf]  ;;  %v1985_v17 = vor.u32 %v2421_v2, %v1984_v63 }
  0x12   :  { %1172 = vmatpush.bf16.msra.mxu2 %v2129_v35  ;;  %v2378_v8 = vld [vmem:[%s3969_s0 + $0x60] sm:$0xf0]  ;;  %v2441_v9 = vld [vmem:[%s3970_s1 + $0x16c] sm:$0xf]  ;;  %v2070_v10 = vld [vmem:[%s3970_s1 + $0x174] sm:$0xf0]  ;;  %v2081_v18 = vor.u32 %v2445_v4, %v2080_v3  ;;  %v2787_v27 = vor.u32 %v2368_v6, %v1768_v5 }
  0x13   :  { %v2356_v11 = vld [vmem:[%s3970_s1 + $0x3a8] sm:$0xf]  ;;  %v2514_v12 = vld [vmem:[%s3970_s1 + $0x3b0] sm:$0xf0]  ;;  %v2366_v14 = vld [vmem:[%s3969_s0 + $0x4] sm:$0xf]  ;;  %v2073_v22 = vor.u32 %v2441_v9, %v2070_v10  ;;  %v2789_v28 = vor.u32 %v2378_v8, %v1808_v7 }
  0x14   :  { %1095 = vmatpush.bf16.msra.mxu0 %v1925_v42  ;;  %2520 = vmatpush.bf16.msra.mxu3 %v1925_v42  ;;  %v1770_v15 = vld [vmem:[%s3969_s0 + $0x14] sm:$0xf0]  ;;  %v1776_v16 = vld [vmem:[%s3969_s0 + $0x8] sm:$0xf]  ;;  %v2369_v19 = vld [vmem:[%s3969_s0 + $0x18] sm:$0xf0]  ;;  %v2357_v23 = vor.u32 %v2514_v12, %v2356_v11 }
  0x15   :  { %1134 = vmatpush.bf16.msra.mxu1 %v2021_v43  ;;  %v2417_v20 = vld [vmem:[%s3970_s1 + $0xac] sm:$0xf]  ;;  %v1974_v21 = vld [vmem:[%s3970_s1 + $0xb4] sm:$0xf0]  ;;  %v2344_v24 = vld [vmem:[%s3970_s1 + $0x390] sm:$0xf]  ;;  %v2800_v32 = vor.u32 %v2366_v14, %v1770_v15  ;;  %v2802_v33 = vor.u32 %v2369_v19, %v1776_v16 }
  0x16   :  { %1173 = vmatpush.bf16.msra.mxu2 %v2117_v44  ;;  %v2260_v25 = vld [vmem:[%s3970_s1 + $0x2e8] sm:$0xf]  ;;  %v2490_v26 = vld [vmem:[%s3970_s1 + $0x2f0] sm:$0xf0]  ;;  %v2511_v29 = vld [vmem:[%s3970_s1 + $0x398] sm:$0xf0]  ;;  %v1977_v34 = vor.u32 %v2417_v20, %v1974_v21 }
  0x17   :  { %v2438_v30 = vld [vmem:[%s3970_s1 + $0x154] sm:$0xf]  ;;  %v2058_v31 = vld [vmem:[%s3970_s1 + $0x15c] sm:$0xf0]  ;;  %v2332_v35 = vld [vmem:[%s3970_s1 + $0x378] sm:$0xf]  ;;  %v2261_v36 = vor.u32 %v2490_v26, %v2260_v25  ;;  %v2345_v38 = vor.u32 %v2511_v29, %v2344_v24 }
  0x18   :  { %1096 = vmatpush.bf16.msra.mxu0 %v1913_v51  ;;  %2521 = vmatpush.bf16.msra.mxu3 %v1913_v51  ;;  %v2414_v37 = vld [vmem:[%s3970_s1 + $0x94] sm:$0xf]  ;;  %v2061_v39 = vor.u32 %v2438_v30, %v2058_v31  ;;  %v1962_v40 = vld [vmem:[%s3970_s1 + $0x9c] sm:$0xf0]  ;;  %v2248_v41 = vld [vmem:[%s3970_s1 + $0x2d0] sm:$0xf] }
  0x19   :  { %1135 = vmatpush.bf16.msra.mxu1 %v2009_v52  ;;  %v2487_v42 = vld [vmem:[%s3970_s1 + $0x2d8] sm:$0xf0]  ;;  %v2508_v43 = vld [vmem:[%s3970_s1 + $0x380] sm:$0xf0]  ;;  %v2046_v45 = vld [vmem:[%s3970_s1 + $0x144] sm:$0xf0]  ;;  %v1965_v48 = vor.u32 %v2414_v37, %v1962_v40 }
  0x1a   :  { %1174 = vmatpush.bf16.msra.mxu2 %v2105_v53  ;;  %v2435_v44 = vld [vmem:[%s3970_s1 + $0x13c] sm:$0xf]  ;;  %v2320_v46 = vld [vmem:[%s3970_s1 + $0x360] sm:$0xf]  ;;  %v2505_v47 = vld [vmem:[%s3970_s1 + $0x368] sm:$0xf0]  ;;  %v2249_v49 = vor.u32 %v2487_v42, %v2248_v41  ;;  %v2333_v51 = vor.u32 %v2508_v43, %v2332_v35 }
  0x1b   :  { %v2236_v50 = vld [vmem:[%s3970_s1 + $0x2b8] sm:$0xf]  ;;  %v2049_v52 = vor.u32 %v2435_v44, %v2046_v45  ;;  %v2484_v53 = vld [vmem:[%s3970_s1 + $0x2c0] sm:$0xf0]  ;;  %v2411_v54 = vld [vmem:[%s3970_s1 + $0x7c] sm:$0xf] }
  0x1c   :  { %1097 = vmatpush.bf16.msra.mxu0 %v1901_v60  ;;  %2522 = vmatpush.bf16.msra.mxu3 %v1901_v60  ;;  %v1950_v55 = vld [vmem:[%s3970_s1 + $0x84] sm:$0xf0]  ;;  %v2432_v56 = vld [vmem:[%s3970_s1 + $0x124] sm:$0xf]  ;;  %v2034_v57 = vld [vmem:[%s3970_s1 + $0x12c] sm:$0xf0] }
  0x1d   :  { %1136 = vmatpush.bf16.msra.mxu1 %v1997_v0 }
  0x1e   :  { %1175 = vmatpush.bf16.msra.mxu2 %v2093_v1 }
  0x20   :  { %1098 = vmatpush.bf16.msra.mxu0 %v1889_v13  ;;  %2523 = vmatpush.bf16.msra.mxu3 %v1889_v13 }
  0x21   :  { %1137 = vmatpush.bf16.msra.mxu1 %v1985_v17 }
  0x22   :  { %1176 = vmatpush.bf16.msra.mxu2 %v2081_v18 }
  0x23   :  { %1099 = vmatmul.bf16.vlgmr.msra.gmra.mxu0 %v2787_v27  ;;  %1109 = vmatmul.bf16.vlgmr.msra.gmra.mxu3 %v2789_v28 }
  0x24   :  { %1247 = vmatpush.bf16.msrb.mxu0 %v2357_v23  ;;  %1138 = vmatmul.bf16.vlgmr.msra.gmra.mxu1 %v2800_v32 }
  0x25   :  { %1177 = vmatmul.bf16.vlgmr.msra.gmra.mxu2 %v2802_v33  ;;  %1286 = vmatpush.bf16.msrb.mxu1 %v1977_v34 }
  0x26   :  { %1325 = vmatpush.bf16.msrb.mxu2 %v2073_v22  ;;  %1208 = vmatpush.bf16.msrb.mxu3 %v2261_v36 }
  0x28   :  { %1248 = vmatpush.bf16.msrb.mxu0 %v2345_v38 }
  0x2a   :  { %1326 = vmatpush.bf16.msrb.mxu2 %v2061_v39 }
  0x2b   :  { %8 = vsyncpa [#allocation3], 0  ;;  %1287 = vmatpush.bf16.msrb.mxu1 %v1965_v48  ;;  %1209 = vmatpush.bf16.msrb.mxu3 %v2249_v49  ;;  %v2237_v58 = vor.u32 %v2484_v53, %v2236_v50  ;;  %v1953_v59 = vor.u32 %v2411_v54, %v1950_v55  ;;  %v2224_v60 = vld [vmem:[%s3970_s1 + $0x2a0] sm:$0xf]  ;;  %v2321_v61 = vor.u32 %v2505_v47, %v2320_v46  ;;  %v1788_v62 = vld [vmem:[%s3969_s0 + $0x28] sm:$0xf] }
  0x2c   :  { %1249 = vmatpush.bf16.msrb.mxu0 %v2333_v51  ;;  %v2481_v63 = vld [vmem:[%s3970_s1 + $0x2a8] sm:$0xf0]  ;;  %v2037_v0 = vor.u32 %v2432_v56, %v2034_v57  ;;  %v2408_v1 = vld [vmem:[%s3970_s1 + $0x64] sm:$0xf]  ;;  %v1938_v2 = vld [vmem:[%s3970_s1 + $0x6c] sm:$0xf0] }
  0x2d   :  { %v2373_v3 = vld [vmem:[%s3969_s0 + $0x38] sm:$0xf0]  ;;  %v2308_v4 = vld [vmem:[%s3970_s1 + $0x348] sm:$0xf]  ;;  %v2502_v5 = vld [vmem:[%s3970_s1 + $0x350] sm:$0xf0]  ;;  %v2225_v12 = vor.u32 %v2481_v63, %v2224_v60  ;;  %v1941_v13 = vor.u32 %v2408_v1, %v1938_v2 }
  0x2e   :  { %1327 = vmatpush.bf16.msrb.mxu2 %v2049_v52  ;;  %v1828_v6 = vld [vmem:[%s3969_s0 + $0x78] sm:$0xf]  ;;  %v2383_v7 = vld [vmem:[%s3969_s0 + $0x88] sm:$0xf0]  ;;  %v1790_v9 = vld [vmem:[%s3969_s0 + $0x3c] sm:$0xf0]  ;;  %v2309_v14 = vor.u32 %v2502_v5, %v2308_v4  ;;  %v2904_v17 = vor.u32 %v2373_v3, %v1788_v62 }
  0x2f   :  { %v2371_v8 = vld [vmem:[%s3969_s0 + $0x2c] sm:$0xf]  ;;  %v1796_v10 = vld [vmem:[%s3969_s0 + $0x30] sm:$0xf]  ;;  %v2374_v11 = vld [vmem:[%s3969_s0 + $0x40] sm:$0xf0]  ;;  %1210 = vmatpush.bf16.msrb.mxu3 %v2237_v58  ;;  %1288 = vmatpush.bf16.msrb.mxu1 %v1953_v59  ;;  %v2906_v18 = vor.u32 %v2383_v7, %v1828_v6 }
  0x30   :  { %1250 = vmatpush.bf16.msrb.mxu0 %v2321_v61  ;;  %v2212_v15 = vld [vmem:[%s3970_s1 + $0x288] sm:$0xf]  ;;  %v2478_v16 = vld [vmem:[%s3970_s1 + $0x290] sm:$0xf0]  ;;  %v2296_v19 = vld [vmem:[%s3970_s1 + $0x330] sm:$0xf]  ;;  %v2914_v21 = vor.u32 %v2371_v8, %v1790_v9  ;;  %v2916_v22 = vor.u32 %v2374_v11, %v1796_v10 }
  0x31   :  { %v2499_v20 = vld [vmem:[%s3970_s1 + $0x338] sm:$0xf0]  ;;  %v2213_v23 = vor.u32 %v2478_v16, %v2212_v15  ;;  %v2284_v25 = vld [vmem:[%s3970_s1 + $0x318] sm:$0xf]  ;;  %v2496_v26 = vld [vmem:[%s3970_s1 + $0x320] sm:$0xf0] }
  0x32   :  { %1328 = vmatpush.bf16.msrb.mxu2 %v2037_v0  ;;  %v2297_v24 = vor.u32 %v2499_v20, %v2296_v19  ;;  %v2429_v29 = vld [vmem:[%s3970_s1 + $0x10c] sm:$0xf]  ;;  %v2022_v30 = vld [vmem:[%s3970_s1 + $0x114] sm:$0xf0]  ;;  %v2200_v31 = vld [vmem:[%s3970_s1 + $0x270] sm:$0xf]  ;;  %v2285_v38 = vor.u32 %v2496_v26, %v2284_v25 }
  0x33   :  { %1211 = vmatpush.bf16.msrb.mxu3 %v2225_v12  ;;  %1289 = vmatpush.bf16.msrb.mxu1 %v1941_v13  ;;  %v2025_v34 = vor.u32 %v2429_v29, %v2022_v30  ;;  %v2475_v35 = vld [vmem:[%s3970_s1 + $0x278] sm:$0xf0]  ;;  %v2405_v36 = vld [vmem:[%s3970_s1 + $0x4c] sm:$0xf]  ;;  %v1926_v37 = vld [vmem:[%s3970_s1 + $0x54] sm:$0xf0] }
  0x34   :  { %1251 = vmatpush.bf16.msrb.mxu0 %v2309_v14  ;;  %1114 = vmatmul.bf16.gmra.mxu3 %v2906_v18  ;;  %v2272_v39 = vld [vmem:[%s3970_s1 + $0x300] sm:$0xf]  ;;  %v2493_v40 = vld [vmem:[%s3970_s1 + $0x308] sm:$0xf0]  ;;  %v2201_v41 = vor.u32 %v2475_v35, %v2200_v31  ;;  %v1929_v42 = vor.u32 %v2405_v36, %v1926_v37  ;;  %v2188_v43 = vld [vmem:[%s3970_s1 + $0x258] sm:$0xf] }
  0x35   :  { %1104 = vmatmul.bf16.gmra.mxu0 %v2904_v17  ;;  %1143 = vmatmul.bf16.gmra.mxu1 %v2914_v21  ;;  %v2472_v44 = vld [vmem:[%s3970_s1 + $0x260] sm:$0xf0]  ;;  %v2426_v45 = vld [vmem:[%s3970_s1 + $0xf4] sm:$0xf]  ;;  %v2010_v46 = vld [vmem:[%s3970_s1 + $0xfc] sm:$0xf0]  ;;  %v2273_v51 = vor.u32 %v2493_v40, %v2272_v39 }
  0x36   :  { %1182 = vmatmul.bf16.gmra.mxu2 %v2916_v22  ;;  %v2489_v47 = vld [vmem:[%s3970_s1 + $0x2ec] sm:$0xf]  ;;  %v2262_v48 = vld [vmem:[%s3970_s1 + $0x2f4] sm:$0xf0]  ;;  %v2013_v49 = vor.u32 %v2426_v45, %v2010_v46  ;;  %v2189_v50 = vor.u32 %v2472_v44, %v2188_v43  ;;  %v2176_v52 = vld [vmem:[%s3970_s1 + $0x240] sm:$0xf] }
  0x37   :  { %1212 = vmatpush.bf16.msrb.mxu3 %v2213_v23  ;;  %1329 = vmatpush.bf16.msrb.mxu2 %v2025_v34  ;;  %v2469_v53 = vld [vmem:[%s3970_s1 + $0x248] sm:$0xf0]  ;;  %v1848_v54 = vld [vmem:[%s3969_s0 + $0xa0] sm:$0xf]  ;;  %v2388_v55 = vld [vmem:[%s3969_s0 + $0xb0] sm:$0xf0]  ;;  %v2265_v56 = vor.u32 %v2489_v47, %v2262_v48 }
  0x38   :  { %1252 = vmatpush.bf16.msrb.mxu0 %v2297_v24  ;;  %1290 = vmatpush.bf16.msrb.mxu1 %v1929_v42  ;;  %v2376_v57 = vld [vmem:[%s3969_s0 + $0x54] sm:$0xf]  ;;  %v1784_v58 = vld [vmem:[%s3969_s0 + $0x10] sm:$0xf]  ;;  %v2370_v59 = vld [vmem:[%s3969_s0 + $0x20] sm:$0xf0]  ;;  %v2177_v63 = vor.u32 %v2469_v53, %v2176_v52  ;;  %v3000_v0 = vor.u32 %v2388_v55, %v1848_v54 }
  0x39   :  { %v1810_v60 = vld [vmem:[%s3969_s0 + $0x64] sm:$0xf0]  ;;  %v1816_v61 = vld [vmem:[%s3969_s0 + $0x58] sm:$0xf]  ;;  %v2379_v62 = vld [vmem:[%s3969_s0 + $0x68] sm:$0xf0]  ;;  %v3002_v1 = vor.u32 %v2370_v59, %v1784_v58 }
  0x3a   :  { %v3004_v2 = vor.u32 %v2376_v57, %v1810_v60  ;;  %v3006_v3 = vor.u32 %v2379_v62, %v1816_v61  ;;  %v2402_v4 = vld [vmem:[%s3970_s1 + $0x34] sm:$0xf]  ;;  %v1914_v5 = vld [vmem:[%s3970_s1 + $0x3c] sm:$0xf0]  ;;  %v2423_v9 = vld [vmem:[%s3970_s1 + $0xdc] sm:$0xf] }
  0x3b   :  { %1213 = vmatpush.bf16.msrb.mxu3 %v2201_v41  ;;  %1330 = vmatpush.bf16.msrb.mxu2 %v2013_v49  ;;  %3980 = vst [vmem:[#allocation5_spill] sm:$0xff] %v3002_v1  ;;  %v2486_v6 = vld [vmem:[%s3970_s1 + $0x2d4] sm:$0xf]  ;;  %v1917_v7 = vor.u32 %v2402_v4, %v1914_v5  ;;  %v2250_v8 = vld [vmem:[%s3970_s1 + $0x2dc] sm:$0xf0]  ;;  %s1754_s16 = sshll.u32 %s3972_s3, 4  ;;  %s1755_s16 = int_to_ptr.hbm [resolvable:$true] %s1754_s16 }
  0x3c   :  { %1253 = vmatpush.bf16.msrb.mxu0 %v2285_v38  ;;  %v1998_v10 = vld [vmem:[%s3970_s1 + $0xe4] sm:$0xf0]  ;;  %v2253_v11 = vor.u32 %v2486_v6, %v2250_v8  ;;  %v2465_v13 = vld [vmem:[%s3970_s1 + $0x22c] sm:$0xf]  ;;  %v2166_v14 = vld [vmem:[%s3970_s1 + $0x234] sm:$0xf0] }
  0x3d   :  { %v2001_v12 = vor.u32 %v2423_v9, %v1998_v10  ;;  %v2399_v15 = vld [vmem:[%s3970_s1 + $0x1c] sm:$0xf]  ;;  %1291 = vmatpush.bf16.msrb.mxu1 %v1917_v7  ;;  %v2169_v16 = vor.u32 %v2465_v13, %v2166_v14  ;;  %v1902_v19 = vld [vmem:[%s3970_s1 + $0x24] sm:$0xf0]  ;;  %v1804_v31 = vld [vmem:[%s3969_s0 + $0x38] sm:$0xf] }
  0x3e   :  { %v2483_v20 = vld [vmem:[%s3970_s1 + $0x2bc] sm:$0xf]  ;;  %v2238_v23 = vld [vmem:[%s3970_s1 + $0x2c4] sm:$0xf0]  ;;  %v1905_v24 = vor.u32 %v2399_v15, %v1902_v19  ;;  %v2375_v34 = vld [vmem:[%s3969_s0 + $0x48] sm:$0xf0] }
  0x3f   :  { %1214 = vmatpush.bf16.msrb.mxu3 %v2189_v50  ;;  %1331 = vmatpush.bf16.msrb.mxu2 %v2001_v12  ;;  %v2241_v25 = vor.u32 %v2483_v20, %v2238_v23  ;;  %v1868_v26 = vld [vmem:[%s3969_s0 + $0xc8] sm:$0xf]  ;;  %v2393_v29 = vld [vmem:[%s3969_s0 + $0xd8] sm:$0xf0]  ;;  %v1830_v35 = vld [vmem:[%s3969_s0 + $0x8c] sm:$0xf0]  ;;  %v3074_v39 = vor.u32 %v2375_v34, %v1804_v31 }
  0x40   :  { %1254 = vmatpush.bf16.msrb.mxu0 %v2273_v51  ;;  %v2381_v30 = vld [vmem:[%s3969_s0 + $0x7c] sm:$0xf]  ;;  %v1836_v36 = vld [vmem:[%s3969_s0 + $0x80] sm:$0xf]  ;;  %v2384_v37 = vld [vmem:[%s3969_s0 + $0x90] sm:$0xf0]  ;;  %v3072_v38 = vor.u32 %v2393_v29, %v1868_v26 }
  0x41   :  { %1292 = vmatpush.bf16.msrb.mxu1 %v1905_v24  ;;  %v3076_v40 = vor.u32 %v2381_v30, %v1830_v35  ;;  %v3078_v41 = vor.u32 %v2384_v37, %v1836_v36  ;;  %v2420_v42 = vld [vmem:[%s3970_s1 + $0xc4] sm:$0xf]  ;;  %v1986_v43 = vld [vmem:[%s3970_s1 + $0xcc] sm:$0xf0]  ;;  %v2462_v44 = vld [vmem:[%s3970_s1 + $0x214] sm:$0xf] }
  0x42   :  { %v1989_v45 = vor.u32 %v2420_v42, %v1986_v43  ;;  %v2154_v46 = vld [vmem:[%s3970_s1 + $0x21c] sm:$0xf0]  ;;  %v2396_v47 = vld [vmem:[%s3970_s1 + $0x4] sm:$0xf]  ;;  %v1890_v48 = vld [vmem:[%s3970_s1 + $0xc] sm:$0xf0] }
  0x43   :  { %1215 = vmatpush.bf16.msrb.mxu3 %v2177_v63  ;;  %v2157_v49 = vor.u32 %v2462_v44, %v2154_v46  ;;  %v1893_v50 = vor.u32 %v2396_v47, %v1890_v48  ;;  %v2480_v51 = vld [vmem:[%s3970_s1 + $0x2a4] sm:$0xf]  ;;  %v2226_v52 = vld [vmem:[%s3970_s1 + $0x2ac] sm:$0xf0]  ;;  %v2367_v55 = vld [vmem:[%s3969_s0 + $0xc] sm:$0xf] }
  0x44   :  { %1403 = vmatpush.bf16.msra.mxu0 %v2265_v56  ;;  %1119 = vmatmul.bf16.gmra.mxu3 %v3000_v0  ;;  %v2229_v53 = vor.u32 %v2480_v51, %v2226_v52  ;;  %v2386_v54 = vld [vmem:[%s3969_s0 + $0xa4] sm:$0xf]  ;;  %v1778_v56 = vld [vmem:[%s3969_s0 + $0x1c] sm:$0xf0]  ;;  %v2380_v58 = vld [vmem:[%s3969_s0 + $0x70] sm:$0xf0] }
  0x45   :  { %1255 = vmatmul.bf16.vlgmr.msrb.gmra.mxu0 %v3002_v1  ;;  %1148 = vmatmul.bf16.gmra.mxu1 %v3004_v2  ;;  %v1824_v57 = vld [vmem:[%s3969_s0 + $0x60] sm:$0xf]  ;;  %v1850_v59 = vld [vmem:[%s3969_s0 + $0xb4] sm:$0xf0]  ;;  %v1856_v60 = vld [vmem:[%s3969_s0 + $0xa8] sm:$0xf]  ;;  %v3132_v62 = vor.u32 %v2367_v55, %v1778_v56 }
  0x46   :  { %1187 = vmatmul.bf16.gmra.mxu2 %v3006_v3  ;;  %1293 = vmatpush.bf16.msrb.mxu1 %v1893_v50  ;;  %v2389_v61 = vld [vmem:[%s3969_s0 + $0xb8] sm:$0xf0]  ;;  %v3134_v63 = vor.u32 %v2380_v58, %v1824_v57  ;;  %v3136_v4 = vor.u32 %v2386_v54, %v1850_v59  ;;  %v1980_v6 = vld [vmem:[%s3970_s1 + $0xb0] sm:$0xf]  ;;  %v2142_v10 = vld [vmem:[%s3970_s1 + $0x204] sm:$0xf0] }
  0x47   :  { %1364 = vmatpush.bf16.msra.mxu3 %v2169_v16  ;;  %1332 = vmatpush.bf16.msrb.mxu2 %v1989_v45  ;;  %3981 = vst [vmem:[#allocation6_spill] sm:$0xff] %v3132_v62  ;;  %v3138_v5 = vor.u32 %v2389_v61, %v1856_v60  ;;  %v2419_v7 = vld [vmem:[%s3970_s1 + $0xb8] sm:$0xf0]  ;;  %v2358_v12 = vld [vmem:[%s3970_s1 + $0x3b4] sm:$0xf0]  ;;  %s2570_s17 = smov 384  }
  0x48   :  { %1404 = vmatpush.bf16.msra.mxu0 %v2253_v11  ;;  %3982 = vst [vmem:[#allocation7_spill] sm:$0xff] %v3136_v4  ;;  %v2459_v8 = vld [vmem:[%s3970_s1 + $0x1fc] sm:$0xf]  ;;  %v1981_v9 = vor.u32 %v2419_v7, %v1980_v6  ;;  %v2513_v11 = vld [vmem:[%s3970_s1 + $0x3ac] sm:$0xf]  ;;  %s2571_s18 = smov 24  }
  0x49   :  { %v2145_v13 = vor.u32 %v2459_v8, %v2142_v10  ;;  %v2361_v14 = vor.u32 %v2513_v11, %v2358_v12  ;;  %v2477_v15 = vld [vmem:[%s3970_s1 + $0x28c] sm:$0xf]  ;;  %v2214_v16 = vld [vmem:[%s3970_s1 + $0x294] sm:$0xf0]  ;;  %v2416_v23 = vld [vmem:[%s3970_s1 + $0xa0] sm:$0xf0] }
  0x4a   :  { %v1968_v19 = vld [vmem:[%s3970_s1 + $0x98] sm:$0xf]  ;;  %v2217_v20 = vor.u32 %v2477_v15, %v2214_v16  ;;  %v2456_v24 = vld [vmem:[%s3970_s1 + $0x1e4] sm:$0xf]  ;;  %v2391_v30 = vld [vmem:[%s3969_s0 + $0xcc] sm:$0xf] }
  0x4b   :  { %1365 = vmatpush.bf16.msra.mxu3 %v2157_v49  ;;  %1481 = vmatpush.bf16.msra.mxu2 %v1981_v9  ;;  %v1969_v26 = vor.u32 %v2416_v23, %v1968_v19  ;;  %v2372_v31 = vld [vmem:[%s3969_s0 + $0x34] sm:$0xf]  ;;  %v1798_v34 = vld [vmem:[%s3969_s0 + $0x44] sm:$0xf0]  ;;  %v2385_v36 = vld [vmem:[%s3969_s0 + $0x98] sm:$0xf0] }
  0x4c   :  { %1405 = vmatpush.bf16.msra.mxu0 %v2241_v25  ;;  %v2130_v25 = vld [vmem:[%s3970_s1 + $0x1ec] sm:$0xf0]  ;;  %1442 = vmatpush.bf16.msra.mxu1 %v2361_v14  ;;  %v1844_v35 = vld [vmem:[%s3969_s0 + $0x88] sm:$0xf]  ;;  %v1870_v37 = vld [vmem:[%s3969_s0 + $0xdc] sm:$0xf0]  ;;  %v3204_v44 = vor.u32 %v2372_v31, %v1798_v34 }
  0x4d   :  { %v2133_v29 = vor.u32 %v2456_v24, %v2130_v25  ;;  %v1876_v42 = vld [vmem:[%s3969_s0 + $0xd0] sm:$0xf]  ;;  %v2394_v43 = vld [vmem:[%s3969_s0 + $0xe0] sm:$0xf0]  ;;  %v3206_v45 = vor.u32 %v2385_v36, %v1844_v35  ;;  %v3208_v46 = vor.u32 %v2391_v30, %v1870_v37  ;;  %v2510_v48 = vld [vmem:[%s3970_s1 + $0x394] sm:$0xf] }
  0x4e   :  { %v3210_v47 = vor.u32 %v2394_v43, %v1876_v42  ;;  %v2346_v49 = vld [vmem:[%s3970_s1 + $0x39c] sm:$0xf0]  ;;  %v2474_v50 = vld [vmem:[%s3970_s1 + $0x274] sm:$0xf]  ;;  %v2413_v54 = vld [vmem:[%s3970_s1 + $0x88] sm:$0xf0] }
  0x4f   :  { %1366 = vmatpush.bf16.msra.mxu3 %v2145_v13  ;;  %1482 = vmatpush.bf16.msra.mxu2 %v1969_v26  ;;  %3983 = vst [vmem:[#allocation8_spill] sm:$0xff] %v3208_v46  ;;  %v2349_v51 = vor.u32 %v2510_v48, %v2346_v49  ;;  %v2202_v52 = vld [vmem:[%s3970_s1 + $0x27c] sm:$0xf0]  ;;  %v2471_v57 = vld [vmem:[%s3970_s1 + $0x25c] sm:$0xf] }
  0x50   :  { %1406 = vmatpush.bf16.msra.mxu0 %v2229_v53  ;;  %v1956_v53 = vld [vmem:[%s3970_s1 + $0x80] sm:$0xf]  ;;  %v2205_v55 = vor.u32 %v2474_v50, %v2202_v52  ;;  %v2190_v58 = vld [vmem:[%s3970_s1 + $0x264] sm:$0xf0]  ;;  %v2453_v59 = vld [vmem:[%s3970_s1 + $0x1cc] sm:$0xf] }
  0x51   :  { %v1957_v56 = vor.u32 %v2413_v54, %v1956_v53  ;;  %1443 = vmatpush.bf16.msra.mxu1 %v2349_v51  ;;  %v2118_v60 = vld [vmem:[%s3970_s1 + $0x1d4] sm:$0xf0]  ;;  %v2507_v61 = vld [vmem:[%s3970_s1 + $0x37c] sm:$0xf]  ;;  %v2334_v6 = vld [vmem:[%s3970_s1 + $0x384] sm:$0xf0]  ;;  %v2193_v7 = vor.u32 %v2471_v57, %v2190_v58 }
  0x52   :  { %v2121_v8 = vor.u32 %v2453_v59, %v2118_v60  ;;  %v2337_v9 = vor.u32 %v2507_v61, %v2334_v6  ;;  %v2377_v10 = vld [vmem:[%s3969_s0 + $0x5c] sm:$0xf]  ;;  %v1818_v11 = vld [vmem:[%s3969_s0 + $0x6c] sm:$0xf0]  ;;  %v2390_v13 = vld [vmem:[%s3969_s0 + $0xc0] sm:$0xf0] }
  0x53   :  { %1367 = vmatpush.bf16.msra.mxu3 %v2133_v29  ;;  %1483 = vmatpush.bf16.msra.mxu2 %v1957_v56  ;;  %v1864_v12 = vld [vmem:[%s3969_s0 + $0xb0] sm:$0xf]  ;;  %v2468_v14 = vld [vmem:[%s3970_s1 + $0x244] sm:$0xf]  ;;  %v3270_v16 = vor.u32 %v2377_v10, %v1818_v11  ;;  %v1944_v23 = vld [vmem:[%s3970_s1 + $0x68] sm:$0xf] }
  0x54   :  { %1124 = vmatmul.bf16.gmra.mxu3 %v3072_v38  ;;  %1407 = vmatpush.bf16.msra.mxu0 %v2217_v20  ;;  %v2178_v15 = vld [vmem:[%s3970_s1 + $0x24c] sm:$0xf0]  ;;  %v3272_v19 = vor.u32 %v2390_v13, %v1864_v12  ;;  %v2410_v24 = vld [vmem:[%s3970_s1 + $0x70] sm:$0xf0]  ;;  %v2106_v29 = vld [vmem:[%s3970_s1 + $0x1bc] sm:$0xf0] }
  0x55   :  { %1260 = vmatmul.bf16.gmra.mxu0 %v3074_v39  ;;  %1153 = vmatmul.bf16.gmra.mxu1 %v3076_v40  ;;  %3984 = vst [vmem:[#allocation9_spill] sm:$0xff] %v3270_v16  ;;  %v2181_v20 = vor.u32 %v2468_v14, %v2178_v15  ;;  %v1945_v25 = vor.u32 %v2410_v24, %v1944_v23  ;;  %v2450_v26 = vld [vmem:[%s3970_s1 + $0x1b4] sm:$0xf]  ;;  %v2504_v30 = vld [vmem:[%s3970_s1 + $0x364] sm:$0xf] }
  0x56   :  { %1192 = vmatmul.bf16.gmra.mxu2 %v3078_v41  ;;  %1444 = vmatpush.bf16.msra.mxu1 %v2337_v9  ;;  %v2382_v31 = vld [vmem:[%s3969_s0 + $0x84] sm:$0xf]  ;;  %v2109_v34 = vor.u32 %v2450_v26, %v2106_v29  ;;  %v2322_v35 = vld [vmem:[%s3970_s1 + $0x36c] sm:$0xf0]  ;;  %v1838_v36 = vld [vmem:[%s3969_s0 + $0x94] sm:$0xf0] }
  0x57   :  { %1368 = vmatpush.bf16.msra.mxu3 %v2121_v8  ;;  %1484 = vmatpush.bf16.msra.mxu2 %v1945_v25  ;;  %v1884_v37 = vld [vmem:[%s3969_s0 + $0xd8] sm:$0xf]  ;;  %v2395_v42 = vld [vmem:[%s3969_s0 + $0xe8] sm:$0xf0]  ;;  %v2325_v43 = vor.u32 %v2504_v30, %v2322_v35  ;;  %v3308_v48 = vor.u32 %v2382_v31, %v1838_v36  ;;  %v1932_v50 = vld [vmem:[%s3970_s1 + $0x50] sm:$0xf] }
  0x58   :  { %1408 = vmatpush.bf16.msra.mxu0 %v2205_v55  ;;  %v3310_v49 = vor.u32 %v2395_v42, %v1884_v37  ;;  %v2407_v51 = vld [vmem:[%s3970_s1 + $0x58] sm:$0xf0]  ;;  %v2094_v54 = vld [vmem:[%s3970_s1 + $0x1a4] sm:$0xf0]  ;;  %v2501_v56 = vld [vmem:[%s3970_s1 + $0x34c] sm:$0xf] }
  0x59   :  { %3985 = vst [vmem:[#allocation10_spill] sm:$0xff] %v3308_v48  ;;  %v2447_v52 = vld [vmem:[%s3970_s1 + $0x19c] sm:$0xf]  ;;  %v1933_v53 = vor.u32 %v2407_v51, %v1932_v50  ;;  %v2310_v57 = vld [vmem:[%s3970_s1 + $0x354] sm:$0xf0] }
  0x5a   :  { %1445 = vmatpush.bf16.msra.mxu1 %v2325_v43  ;;  %v2097_v55 = vor.u32 %v2447_v52, %v2094_v54  ;;  %v2313_v58 = vor.u32 %v2501_v56, %v2310_v57  ;;  %v2172_v59 = vld [vmem:[%s3970_s1 + $0x230] sm:$0xf]  ;;  %v2467_v60 = vld [vmem:[%s3970_s1 + $0x238] sm:$0xf0]  ;;  %v2387_v6 = vld [vmem:[%s3969_s0 + $0xac] sm:$0xf] }
  0x5b   :  { %1369 = vmatpush.bf16.msra.mxu3 %v2109_v34  ;;  %1485 = vmatpush.bf16.msra.mxu2 %v1933_v53  ;;  %v2173_v61 = vor.u32 %v2467_v60, %v2172_v59  ;;  %v2444_v8 = vld [vmem:[%s3970_s1 + $0x184] sm:$0xf]  ;;  %v2082_v9 = vld [vmem:[%s3970_s1 + $0x18c] sm:$0xf0]  ;;  %v1920_v13 = vld [vmem:[%s3970_s1 + $0x38] sm:$0xf] }
  0x5c   :  { %1409 = vmatpush.bf16.msra.mxu0 %v2193_v7  ;;  %v1858_v7 = vld [vmem:[%s3969_s0 + $0xbc] sm:$0xf0]  ;;  %v2085_v11 = vor.u32 %v2444_v8, %v2082_v9  ;;  %v2404_v14 = vld [vmem:[%s3970_s1 + $0x40] sm:$0xf0]  ;;  %v2498_v24 = vld [vmem:[%s3970_s1 + $0x334] sm:$0xf] }
  0x5d   :  { %v3352_v10 = vor.u32 %v2387_v6, %v1858_v7  ;;  %v2298_v25 = vld [vmem:[%s3970_s1 + $0x33c] sm:$0xf0]  ;;  %v2160_v26 = vld [vmem:[%s3970_s1 + $0x218] sm:$0xf]  ;;  %v2464_v30 = vld [vmem:[%s3970_s1 + $0x220] sm:$0xf0] }
  0x5e   :  { %1446 = vmatpush.bf16.msra.mxu1 %v2313_v58  ;;  %v2301_v29 = vor.u32 %v2498_v24, %v2298_v25  ;;  %v2161_v34 = vor.u32 %v2464_v30, %v2160_v26  ;;  %v1908_v43 = vld [vmem:[%s3970_s1 + $0x20] sm:$0xf]  ;;  %v2401_v50 = vld [vmem:[%s3970_s1 + $0x28] sm:$0xf0]  ;;  %v2076_v51 = vld [vmem:[%s3970_s1 + $0x170] sm:$0xf] }
  0x5f   :  { %1370 = vmatpush.bf16.msra.mxu3 %v2097_v55  ;;  %3986 = vst [vmem:[#allocation11_spill] sm:$0xff] %v3352_v10  ;;  %v1909_v52 = vor.u32 %v2401_v50, %v1908_v43  ;;  %v2443_v53 = vld [vmem:[%s3970_s1 + $0x178] sm:$0xf0]  ;;  %v2392_v54 = vld [vmem:[%s3969_s0 + $0xd4] sm:$0xf] }
  0x60   :  { %1410 = vmatpush.bf16.msra.mxu0 %v2181_v20  ;;  %v1921_v20 = vor.u32 %v2404_v14, %v1920_v13  ;;  %v1878_v55 = vld [vmem:[%s3969_s0 + $0xe4] sm:$0xf0]  ;;  %v2077_v56 = vor.u32 %v2443_v53, %v2076_v51  ;;  %v2398_v25 = vld [vmem:[%s3970_s1 + $0x10] sm:$0xf0]  ;;  %v2274_v50 = vld [vmem:[%s3970_s1 + $0x30c] sm:$0xf0] }
  0x61   :  { %v3402_v59 = vor.u32 %v2392_v54, %v1878_v55  ;;  %v2286_v6 = vld [vmem:[%s3970_s1 + $0x324] sm:$0xf0] }
  0x62   :  { %1486 = vmatpush.bf16.msra.mxu2 %v1921_v20  ;;  %1447 = vmatpush.bf16.msra.mxu1 %v2301_v29  ;;  %v1896_v24 = vld [vmem:[%s3970_s1 + $0x8] sm:$0xf] }
  0x63   :  { %1371 = vmatpush.bf16.msra.mxu3 %v2085_v11  ;;  %v2148_v11 = vld [vmem:[%s3970_s1 + $0x200] sm:$0xf]  ;;  %v1897_v29 = vor.u32 %v2398_v25, %v1896_v24  ;;  %v2136_v51 = vld [vmem:[%s3970_s1 + $0x1e8] sm:$0xf] }
  0x64   :  { %1216 = vmatmul.bf16.vlgmr.msrb.gmra.mxu3 %v3132_v62  ;;  %1559 = vmatpush.bf16.msrb.mxu0 %v2173_v61  ;;  %v2495_v61 = vld [vmem:[%s3970_s1 + $0x31c] sm:$0xf] }
  0x65   :  { %1265 = vmatmul.bf16.gmra.mxu0 %v3134_v63  ;;  %1158 = vmatmul.bf16.gmra.mxu1 %v3136_v4  ;;  %v2289_v8 = vor.u32 %v2495_v61, %v2286_v6 }
  0x66   :  { %1197 = vmatmul.bf16.gmra.mxu2 %v3138_v5 }
  0x67   :  { %1487 = vmatpush.bf16.msra.mxu2 %v1909_v52  ;;  %1520 = vmatpush.bf16.msrb.mxu3 %v2077_v56  ;;  %v2458_v52 = vld [vmem:[%s3970_s1 + $0x1f0] sm:$0xf0] }
  0x68   :  { %1560 = vmatpush.bf16.msrb.mxu0 %v2161_v34  ;;  %1448 = vmatpush.bf16.msra.mxu1 %v2289_v8  ;;  %v2064_v34 = vld [vmem:[%s3970_s1 + $0x158] sm:$0xf]  ;;  %v2137_v54 = vor.u32 %v2458_v52, %v2136_v51  ;;  %v2515_v8 = vld [vmem:[%s3970_s1 + $0x3b8] sm:$0xf0] }
  0x6b   :  { %1488 = vmatpush.bf16.msra.mxu2 %v1897_v29 }
  0x74   :  { %1221 = vmatmul.bf16.gmra.mxu3 %v3204_v44 }
  0x75   :  { %1270 = vmatmul.bf16.gmra.mxu0 %v3206_v45  ;;  %1163 = vmatmul.bf16.gmra.mxu1 %v3208_v46 }
  0x76   :  { %1202 = vmatmul.bf16.gmra.mxu2 %v3210_v47 }
  0x84   :  { %1226 = vmatmul.bf16.gmra.mxu3 %v3270_v16 }
  0x85   :  { %1275 = vmatmul.bf16.gmra.mxu0 %v3272_v19  ;;  %1294 = vmatmul.bf16.vlgmr.msrb.gmra.mxu1 %v2787_v27 }
  0x86   :  { %1333 = vmatmul.bf16.vlgmr.msrb.gmra.mxu2 %v2800_v32 }
  0x94   :  { %1231 = vmatmul.bf16.gmra.mxu3 %v3308_v48 }
  0x95   :  { %1280 = vmatmul.bf16.gmra.mxu0 %v3310_v49  ;;  %1299 = vmatmul.bf16.gmra.mxu1 %v2904_v17 }
  0x96   :  { %1338 = vmatmul.bf16.gmra.mxu2 %v2914_v21 }
  0xa0   :  { %v1100_v12 = vpop.f32.mrf.mxu0 }
  0xa1   :  { %v1139_v15 = vpop.f32.mrf.mxu1 }
  0xa2   :  { %v3360_v23 = vadd.f32 %v1139_v15, %v1100_v12  ;;  %v2461_v12 = vld [vmem:[%s3970_s1 + $0x208] sm:$0xf0] }
  0xa3   :  { %v2149_v13 = vor.u32 %v2461_v12, %v2148_v11  ;;  %v2437_v12 = vld [vmem:[%s3970_s1 + $0x148] sm:$0xf0] }
  0xa4   :  { %1236 = vmatmul.bf16.gmra.mxu3 %v3352_v10 }
  0xa5   :  { %1411 = vmatmul.bf16.vlgmr.msra.gmra.mxu0 %v3132_v62  ;;  %1304 = vmatmul.bf16.gmra.mxu1 %v2789_v28 }
  0xa6   :  { %1343 = vmatmul.bf16.gmra.mxu2 %v3004_v2  ;;  %v1110_v31 = vpop.f32.mrf.mxu3  ;;  %1561 = vmatpush.bf16.msrb.mxu0 %v2149_v13 }
  0xa8   :  { %v3378_v35 = vpop.f32.mrf.mxu2  ;;  %v1102_v36 = vpop.f32.mrf.mxu0 }
  0xa9   :  { %v1141_v37 = vpop.f32.mrf.mxu1 }
  0xaa   :  { %v3380_v42 = vadd.f32 %v1141_v37, %v1102_v36  ;;  %v2440_v36 = vld [vmem:[%s3970_s1 + $0x160] sm:$0xf0]  ;;  %1562 = vmatpush.bf16.msrb.mxu0 %v2137_v54 }
  0xab   :  { %v2492_v37 = vld [vmem:[%s3970_s1 + $0x304] sm:$0xf]  ;;  %v2065_v43 = vor.u32 %v2440_v36, %v2064_v34  ;;  %v2268_v34 = vld [vmem:[%s3970_s1 + $0x2f0] sm:$0xf]  ;;  %v2491_v36 = vld [vmem:[%s3970_s1 + $0x2f8] sm:$0xf0] }
  0xac   :  { %v2277_v53 = vor.u32 %v2492_v37, %v2274_v50  ;;  %v2124_v37 = vld [vmem:[%s3970_s1 + $0x1d0] sm:$0xf]  ;;  %v2269_v50 = vor.u32 %v2491_v36, %v2268_v34  ;;  %v2488_v34 = vld [vmem:[%s3970_s1 + $0x2e0] sm:$0xf0] }
  0xad   :  { %1521 = vmatpush.bf16.msrb.mxu3 %v2065_v43 }
  0xae   :  { %v1112_v57 = vpop.f32.mrf.mxu3  ;;  %1449 = vmatpush.bf16.msra.mxu1 %v2277_v53 }
  0xb0   :  { %v3400_v58 = vpop.f32.mrf.mxu2 }
  0xb2   :  { %v1105_v60 = vpop.f32.mrf.mxu0  ;;  %v1144_v7 = vpop.f32.mrf.mxu1  ;;  %2524 = vmatpush.bf16.msrb.mxu1 %v2269_v50 }
  0xb3   :  { %v3410_v9 = vadd.f32 %v1144_v7, %v1105_v60  ;;  %v2364_v7 = vld [vmem:[%s3970_s1 + $0x3b0] sm:$0xf] }
  0xb4   :  { %1241 = vmatmul.bf16.gmra.mxu3 %v3402_v59  ;;  %v3469_v11 = vor.u32 %v2515_v8, %v2364_v7  ;;  %v2352_v7 = vld [vmem:[%s3970_s1 + $0x398] sm:$0xf]  ;;  %v2512_v8 = vld [vmem:[%s3970_s1 + $0x3a0] sm:$0xf0] }
  0xb5   :  { %1416 = vmatmul.bf16.gmra.mxu0 %v3204_v44  ;;  %1309 = vmatmul.bf16.gmra.mxu1 %v2906_v18 }
  0xb6   :  { %1348 = vmatmul.bf16.gmra.mxu2 %v3076_v40 }
  0xb7   :  { %v1115_v14 = vpop.f32.mrf.mxu3  ;;  %2532 = vmatpush.bf16.msrb.mxu2 %v3469_v11 }
  0xb9   :  { %v3422_v15 = vpop.f32.mrf.mxu2 }
  0xba   :  { %v1107_v20 = vpop.f32.mrf.mxu0  ;;  %v1146_v26 = vpop.f32.mrf.mxu1 }
  0xbb   :  { %v3430_v30 = vadd.f32 %v1146_v26, %v1107_v20 }
  0xbf   :  { %v1117_v55 = vpop.f32.mrf.mxu3 }
  0xc1   :  { %v3450_v56 = vpop.f32.mrf.mxu2 }
  0xc2   :  { %v3452_v60 = vpop.f32.mrf.mxu0  ;;  %v1149_v61 = vpop.f32.mrf.mxu1 }
  0xc3   :  { %v3454_v6 = vadd.f32 %v1149_v61, %v1110_v31  ;;  %v2052_v31 = vld [vmem:[%s3970_s1 + $0x140] sm:$0xf] }
  0xc4   :  { %1372 = vmatmul.bf16.vlgmr.msra.gmra.mxu3 %v2802_v33  ;;  %v2053_v20 = vor.u32 %v2437_v12, %v2052_v31  ;;  %v3518_v12 = vor.u32 %v2512_v8, %v2352_v7 }
  0xc5   :  { %1421 = vmatmul.bf16.gmra.mxu0 %v3270_v16  ;;  %1314 = vmatmul.bf16.gmra.mxu1 %v3000_v0 }
  0xc6   :  { %1353 = vmatmul.bf16.gmra.mxu2 %v3136_v4  ;;  %1522 = vmatpush.bf16.msrb.mxu3 %v2053_v20  ;;  %v2434_v20 = vld [vmem:[%s3970_s1 + $0x130] sm:$0xf0] }
  0xc7   :  { %v3474_v13 = vpop.f32.mrf.mxu3  ;;  %2533 = vmatpush.bf16.msrb.mxu2 %v3518_v12 }
  0xc9   :  { %v3476_v24 = vpop.f32.mrf.mxu2 }
  0xca   :  { %v3479_v25 = vpop.f32.mrf.mxu0  ;;  %v1151_v26 = vpop.f32.mrf.mxu1 }
  0xcb   :  { %v3481_v29 = vadd.f32 %v1151_v26, %v1112_v57  ;;  %v2455_v57 = vld [vmem:[%s3970_s1 + $0x1d8] sm:$0xf0]  ;;  %v2256_v26 = vld [vmem:[%s3970_s1 + $0x2d8] sm:$0xf] }
  0xcc   :  { %v2125_v52 = vor.u32 %v2455_v57, %v2124_v37  ;;  %v2257_v57 = vor.u32 %v2488_v34, %v2256_v26  ;;  %v2340_v34 = vld [vmem:[%s3970_s1 + $0x380] sm:$0xf] }
  0xce   :  { %1563 = vmatpush.bf16.msrb.mxu0 %v2125_v52  ;;  %v2112_v52 = vld [vmem:[%s3970_s1 + $0x1b8] sm:$0xf]  ;;  %2525 = vmatpush.bf16.msrb.mxu1 %v2257_v57 }
  0xcf   :  { %v3492_v43 = vpop.f32.mrf.mxu3 }
  0xd1   :  { %v3497_v51 = vpop.f32.mrf.mxu2 }
  0xd2   :  { %v3499_v53 = vpop.f32.mrf.mxu0  ;;  %v1154_v54 = vpop.f32.mrf.mxu1 }
  0xd3   :  { %v3501_v61 = vadd.f32 %v1154_v54, %v1115_v14  ;;  %v2040_v14 = vld [vmem:[%s3970_s1 + $0x128] sm:$0xf]  ;;  %v2452_v54 = vld [vmem:[%s3970_s1 + $0x1c0] sm:$0xf0] }
  0xd4   :  { %1377 = vmatmul.bf16.gmra.mxu3 %v2916_v22  ;;  %v2041_v37 = vor.u32 %v2434_v20, %v2040_v14  ;;  %v2113_v8 = vor.u32 %v2452_v54, %v2112_v52  ;;  %v2100_v14 = vld [vmem:[%s3970_s1 + $0x1a0] sm:$0xf]  ;;  %v2449_v20 = vld [vmem:[%s3970_s1 + $0x1a8] sm:$0xf0]  ;;  %v2431_v54 = vld [vmem:[%s3970_s1 + $0x118] sm:$0xf0] }
  0xd5   :  { %1426 = vmatmul.bf16.gmra.mxu0 %v3308_v48  ;;  %1319 = vmatmul.bf16.gmra.mxu1 %v3072_v38  ;;  %v2101_v26 = vor.u32 %v2449_v20, %v2100_v14  ;;  %v2446_v14 = vld [vmem:[%s3970_s1 + $0x190] sm:$0xf0] }
  0xd6   :  { %1358 = vmatmul.bf16.gmra.mxu2 %v3208_v46  ;;  %1523 = vmatpush.bf16.msrb.mxu3 %v2041_v37  ;;  %v2509_v37 = vld [vmem:[%s3970_s1 + $0x388] sm:$0xf0] }
  0xd7   :  { %v3516_v31 = vpop.f32.mrf.mxu3  ;;  %1564 = vmatpush.bf16.msrb.mxu0 %v2113_v8  ;;  %v3559_v52 = vor.u32 %v2509_v37, %v2340_v34  ;;  %v2088_v8 = vld [vmem:[%s3970_s1 + $0x188] sm:$0xf]  ;;  %v3585_v37 = vld [vmem:[%s3971_s2] sm:$0x7] }
  0xd8   :  { %v2089_v4 = vor.u32 %v2446_v14, %v2088_v8  ;;  %v3598_v8 = vperm.slane %v3585_v37, 0 }
  0xd9   :  { %v3529_v36 = vpop.f32.mrf.mxu2  ;;  %2534 = vmatpush.bf16.msrb.mxu2 %v3559_v52 }
  0xda   :  { %v3537_v7 = vpop.f32.mrf.mxu0  ;;  %v1156_v46 = vpop.f32.mrf.mxu1 }
  0xdb   :  { %v3540_v48 = vadd.f32 %v1156_v46, %v1117_v55  ;;  %v2028_v46 = vld [vmem:[%s3970_s1 + $0x110] sm:$0xf]  ;;  %1565 = vmatpush.bf16.msrb.mxu0 %v2101_v26 }
  0xdc   :  { %v2029_v62 = vor.u32 %v2431_v54, %v2028_v46 }
  0xde   :  { %1524 = vmatpush.bf16.msrb.mxu3 %v2029_v62  ;;  %v1179_v62 = vadd.f32 %v3378_v35, %v3360_v23 }
  0xdf   :  { %v3557_v55 = vpop.f32.mrf.mxu3  ;;  %1566 = vmatpush.bf16.msrb.mxu0 %v2089_v4  ;;  %v2244_v4 = vld [vmem:[%s3970_s1 + $0x2c0] sm:$0xf] }
  0xe1   :  { %v3570_v20 = vpop.f32.mrf.mxu2 }
  0xe2   :  { %v3572_v16 = vpop.f32.mrf.mxu0  ;;  %v1159_v26 = vpop.f32.mrf.mxu1 }
  0xe3   :  { %v3576_v34 = vadd.f32 %v1159_v26, %v3474_v13  ;;  %v2485_v13 = vld [vmem:[%s3970_s1 + $0x2c8] sm:$0xf0]  ;;  %1598 = vmatpush.bf16.msra.mxu0 %v2269_v50 }
  0xe4   :  { %1382 = vmatmul.bf16.gmra.mxu3 %v3006_v3  ;;  %v2245_v54 = vor.u32 %v2485_v13, %v2244_v4  ;;  %v1181_v4 = vadd.f32 %v3400_v58, %v3380_v42  ;;  %v2506_v13 = vld [vmem:[%s3970_s1 + $0x370] sm:$0xf0]  ;;  %v2428_v42 = vld [vmem:[%s3970_s1 + $0x100] sm:$0xf0]  ;;  %v2232_v58 = vld [vmem:[%s3970_s1 + $0x2a8] sm:$0xf] }
  0xe5   :  { %1431 = vmatmul.bf16.gmra.mxu0 %v3352_v10  ;;  %1450 = vmatmul.bf16.vlgmr.msra.gmra.mxu1 %v3002_v1 }
  0xe6   :  { %1489 = vmatmul.bf16.vlgmr.msra.gmra.mxu2 %v2787_v27  ;;  %2526 = vmatpush.bf16.msrb.mxu1 %v2245_v54 }
  0xe7   :  { %v1217_v46 = vpop.f32.mrf.mxu3  ;;  %1599 = vmatpush.bf16.msra.mxu0 %v2257_v57 }
  0xe8   :  { %v1218_v14 = vadd.f32 %v1217_v46, %v1179_v62  ;;  %v2328_v62 = vld [vmem:[%s3970_s1 + $0x368] sm:$0xf] }
  0xe9   :  { %v3595_v27 = vpop.f32.mrf.mxu2  ;;  %v3615_v57 = vor.u32 %v2506_v13, %v2328_v62 }
  0xea   :  { %v3600_v26 = vpop.f32.mrf.mxu0  ;;  %v1257_v23 = vadd.f32 %v3452_v60, %v1218_v14  ;;  %v1161_v35 = vpop.f32.mrf.mxu1 }
  0xeb   :  { %v3604_v10 = vadd.f32 %v1161_v35, %v3492_v43  ;;  %1600 = vmatpush.bf16.msra.mxu0 %v2245_v54  ;;  %v2016_v43 = vld [vmem:[%s3970_s1 + $0xf8] sm:$0xf]  ;;  %v2482_v54 = vld [vmem:[%s3970_s1 + $0x2b0] sm:$0xf0]  ;;  %2535 = vmatpush.bf16.msrb.mxu2 %v3615_v57 }
  0xec   :  { %v1676_v50 = vadd.f32 %v1257_v23, %v3598_v8  ;;  %v2017_v23 = vor.u32 %v2428_v42, %v2016_v43 }
  0xee   :  { %1712 = vst [vmem:[#allocation2] sm:$0xff] %v1676_v50  ;;  %v2233_v50 = vor.u32 %v2482_v54, %v2232_v58  ;;  %1525 = vmatpush.bf16.msrb.mxu3 %v2017_v23  ;;  %v2004_v58 = vld [vmem:[%s3970_s1 + $0xe0] sm:$0xf] }
  0xef   :  { %v1219_v60 = vpop.f32.mrf.mxu3 }
  0xf0   :  { %v1220_v14 = vadd.f32 %v1219_v60, %v1181_v4  ;;  %2527 = vmatpush.bf16.msrb.mxu1 %v2233_v50  ;;  %1601 = vmatpush.bf16.msra.mxu0 %v2233_v50  ;;  %v2503_v60 = vld [vmem:[%s3970_s1 + $0x358] sm:$0xf0] }
  0xf1   :  { %v3626_v46 = vpop.f32.mrf.mxu2 }
  0xf2   :  { %v3631_v35 = vpop.f32.mrf.mxu0  ;;  %v1259_v62 = vadd.f32 %v3479_v25, %v1220_v14  ;;  %v1164_v13 = vpop.f32.mrf.mxu1  ;;  %v1184_v25 = vadd.f32 %v3422_v15, %v3410_v9 }
  0xf3   :  { %v3636_v1 = vadd.f32 %v1164_v13, %v3516_v31  ;;  %v2316_v31 = vld [vmem:[%s3970_s1 + $0x350] sm:$0xf] }
  0xf4   :  { %v1679_v4 = vadd.f32 %v1259_v62, %v3598_v8  ;;  %1387 = vmatmul.bf16.gmra.mxu3 %v3078_v41  ;;  %v3651_v42 = vor.u32 %v2503_v60, %v2316_v31  ;;  %v2479_v31 = vld [vmem:[%s3970_s1 + $0x298] sm:$0xf0] }
  0xf5   :  { %1436 = vmatmul.bf16.gmra.mxu0 %v3402_v59  ;;  %1455 = vmatmul.bf16.gmra.mxu1 %v3074_v39 }
  0xf6   :  { %1494 = vmatmul.bf16.gmra.mxu2 %v2904_v17  ;;  %1715 = vst [vmem:[#allocation2 + $0x18] sm:$0xff] %v1679_v4  ;;  %v2425_v17 = vld [vmem:[%s3970_s1 + $0xe8] sm:$0xf0]  ;;  %v1186_v4 = vadd.f32 %v3450_v56, %v3430_v30 }
  0xf7   :  { %v1222_v43 = vpop.f32.mrf.mxu3  ;;  %v2005_v14 = vor.u32 %v2425_v17, %v2004_v58  ;;  %2536 = vmatpush.bf16.msrb.mxu2 %v3651_v42 }
  0xf8   :  { %v1223_v15 = vadd.f32 %v1222_v43, %v1184_v25  ;;  %v2220_v25 = vld [vmem:[%s3970_s1 + $0x290] sm:$0xf]  ;;  %v2422_v43 = vld [vmem:[%s3970_s1 + $0xd0] sm:$0xf0] }
  0xf9   :  { %v3659_v9 = vpop.f32.mrf.mxu2  ;;  %1526 = vmatpush.bf16.msrb.mxu3 %v2005_v14  ;;  %v2221_v60 = vor.u32 %v2479_v31, %v2220_v25 }
  0xfa   :  { %v3661_v23 = vpop.f32.mrf.mxu0  ;;  %v1262_v54 = vadd.f32 %v3499_v53, %v1223_v15  ;;  %v1166_v50 = vpop.f32.mrf.mxu1 }
  0xfb   :  { %v3666_v62 = vadd.f32 %v1166_v50, %v3557_v55  ;;  %v1992_v55 = vld [vmem:[%s3970_s1 + $0xc8] sm:$0xf]  ;;  %2528 = vmatpush.bf16.msrb.mxu1 %v2221_v60  ;;  %1602 = vmatpush.bf16.msra.mxu0 %v2221_v60  ;;  %v1189_v50 = vadd.f32 %v3476_v24, %v3454_v6 }
  0xfc   :  { %v1682_v13 = vadd.f32 %v1262_v54, %v3598_v8  ;;  %v1993_v58 = vor.u32 %v2422_v43, %v1992_v55 }
  0xfe   :  { %1718 = vst [vmem:[#allocation2 + $0x30] sm:$0xff] %v1682_v13  ;;  %1527 = vmatpush.bf16.msrb.mxu3 %v1993_v58  ;;  %v2500_v13 = vld [vmem:[%s3970_s1 + $0x340] sm:$0xf0]  ;;  %v1191_v58 = vadd.f32 %v3497_v51, %v3481_v29 }
  0xff   :  { %v1224_v53 = vpop.f32.mrf.mxu3 }
 0x100   :  { %v1225_v56 = vadd.f32 %v1224_v53, %v1186_v4 }
 0x101   :  { %v3683_v30 = vpop.f32.mrf.mxu2 }
 0x102   :  { %v3685_v17 = vpop.f32.mrf.mxu0  ;;  %v1264_v15 = vadd.f32 %v3537_v7, %v1225_v56  ;;  %v1295_v14 = vpop.f32.mrf.mxu1  ;;  %v2304_v7 = vld [vmem:[%s3970_s1 + $0x338] sm:$0xf] }
 0x103   :  { %v3701_v25 = vor.u32 %v2500_v13, %v2304_v7 }
 0x104   :  { %v1685_v54 = vadd.f32 %v1264_v15, %v3598_v8  ;;  %1392 = vmatmul.bf16.gmra.mxu3 %v3138_v5  ;;  %v2292_v15 = vld [vmem:[%s3970_s1 + $0x320] sm:$0xf] }
 0x105   :  { %1567 = vmatmul.bf16.vlgmr.msrb.gmra.mxu0 %v2802_v33  ;;  %1460 = vmatmul.bf16.gmra.mxu1 %v3134_v63  ;;  %v2208_v33 = vld [vmem:[%s3970_s1 + $0x278] sm:$0xf] }
 0x106   :  { %1499 = vmatmul.bf16.gmra.mxu2 %v2789_v28  ;;  %1721 = vst [vmem:[#allocation2 + $0x48] sm:$0xff] %v1685_v54  ;;  %v2476_v28 = vld [vmem:[%s3970_s1 + $0x280] sm:$0xf0] }
 0x107   :  { %v1227_v4 = vpop.f32.mrf.mxu3  ;;  %v2209_v31 = vor.u32 %v2476_v28, %v2208_v33  ;;  %2537 = vmatpush.bf16.msrb.mxu2 %v3701_v25  ;;  %v1194_v28 = vadd.f32 %v3529_v36, %v3501_v61 }
 0x108   :  { %v1228_v6 = vadd.f32 %v1227_v4, %v1189_v50 }
 0x109   :  { %v1334_v24 = vpop.f32.mrf.mxu2  ;;  %2529 = vmatpush.bf16.msrb.mxu1 %v2209_v31  ;;  %1603 = vmatpush.bf16.msra.mxu0 %v2209_v31 }
 0x10a   :  { %v3709_v53 = vadd.f32 %v1334_v24, %v1295_v14  ;;  %v3711_v60 = vpop.f32.mrf.mxu0  ;;  %v1267_v55 = vadd.f32 %v3572_v16, %v1228_v6  ;;  %v1297_v43 = vpop.f32.mrf.mxu1  ;;  %v2497_v14 = vld [vmem:[%s3970_s1 + $0x328] sm:$0xf0]  ;;  %v2196_v6 = vld [vmem:[%s3970_s1 + $0x260] sm:$0xf] }
 0x10b   :  { %v3724_v50 = vor.u32 %v2497_v14, %v2292_v15  ;;  %v2280_v15 = vld [vmem:[%s3970_s1 + $0x308] sm:$0xf]  ;;  %v2494_v14 = vld [vmem:[%s3970_s1 + $0x310] sm:$0xf0] }
 0x10c   :  { %v1688_v56 = vadd.f32 %v1267_v55, %v3598_v8 }
 0x10d   :  { %2538 = vmatpush.bf16.msrb.mxu2 %v3724_v50 }
 0x10e   :  { %1724 = vst [vmem:[#allocation2 + $0x60] sm:$0xff] %v1688_v56 }
 0x10f   :  { %v1229_v54 = vpop.f32.mrf.mxu3 }
 0x110   :  { %v1230_v16 = vadd.f32 %v1229_v54, %v1191_v58  ;;  %v1196_v58 = vadd.f32 %v3570_v20, %v3540_v48 }
 0x111   :  { %v1336_v7 = vpop.f32.mrf.mxu2 }
 0x112   :  { %v3726_v13 = vadd.f32 %v1336_v7, %v1297_v43  ;;  %v3728_v4 = vpop.f32.mrf.mxu0  ;;  %v1269_v29 = vadd.f32 %v3600_v26, %v1230_v16  ;;  %v1300_v51 = vpop.f32.mrf.mxu1  ;;  %v2473_v26 = vld [vmem:[%s3970_s1 + $0x268] sm:$0xf0]  ;;  %v2281_v16 = vor.u32 %v2494_v14, %v2280_v15  ;;  %v2470_v7 = vld [vmem:[%s3970_s1 + $0x250] sm:$0xf0] }
 0x113   :  { %v2197_v31 = vor.u32 %v2473_v26, %v2196_v6 }
 0x114   :  { %v1691_v33 = vadd.f32 %v1269_v29, %v3598_v8  ;;  %1397 = vmatmul.bf16.gmra.mxu3 %v3210_v47  ;;  %2539 = vmatpush.bf16.msrb.mxu2 %v2281_v16 }
 0x115   :  { %1572 = vmatmul.bf16.gmra.mxu0 %v2916_v22  ;;  %1465 = vmatmul.bf16.gmra.mxu1 %v3206_v45 }
 0x116   :  { %1504 = vmatmul.bf16.gmra.mxu2 %v2906_v18  ;;  %1727 = vst [vmem:[#allocation2 + $0x78] sm:$0xff] %v1691_v33  ;;  %2530 = vmatpush.bf16.msrb.mxu1 %v2197_v31 }
 0x117   :  { %v1232_v24 = vpop.f32.mrf.mxu3  ;;  %1604 = vmatpush.bf16.msra.mxu0 %v2197_v31 }
 0x118   :  { %v1233_v55 = vadd.f32 %v1232_v24, %v1194_v28  ;;  %v1199_v24 = vadd.f32 %v3595_v27, %v3576_v34  ;;  %v1201_v34 = vadd.f32 %v3626_v46, %v3604_v10  ;;  %v1204_v10 = vadd.f32 %v3659_v9, %v3636_v1 }
 0x119   :  { %v1339_v22 = vpop.f32.mrf.mxu2  ;;  %v1206_v1 = vadd.f32 %v3683_v30, %v3666_v62 }
 0x11a   :  { %v3745_v43 = vadd.f32 %v1339_v22, %v1300_v51  ;;  %v3747_v56 = vpop.f32.mrf.mxu0  ;;  %v1272_v18 = vadd.f32 %v3631_v35, %v1233_v55  ;;  %v1302_v61 = vpop.f32.mrf.mxu1  ;;  %v2184_v35 = vld [vmem:[%s3970_s1 + $0x248] sm:$0xf]  ;;  %s2569_s1 = smov [#allocation2]  }
 0x11b   :  { %v2185_v29 = vor.u32 %v2470_v7, %v2184_v35  ;;  %s1752_s13 = sshll.u32 %s2569_s1, 4  ;;  %s1753_s13 = int_to_ptr.vmem [resolvable:$true] %s1752_s13 }
 0x11c   :  { %v1694_v36 = vadd.f32 %v1272_v18, %v3598_v8 }
 0x11d   :  { %2531 = vmatpush.bf16.msrb.mxu1 %v2185_v29  ;;  %1605 = vmatpush.bf16.msra.mxu0 %v2185_v29 }
 0x11e   :  { %1730 = vst [vmem:[#allocation2 + $0x90] sm:$0xff] %v1694_v36 }
 0x11f   :  { %v1234_v54 = vpop.f32.mrf.mxu3 }
 0x120   :  { %v1235_v48 = vadd.f32 %v1234_v54, %v1196_v58 }
 0x121   :  { %v1341_v20 = vpop.f32.mrf.mxu2  ;;  %1637 = vmatpush.bf16.msrb.mxu0 %v3469_v11 }
 0x122   :  { %v3765_v51 = vadd.f32 %v1341_v20, %v1302_v61  ;;  %v3767_v33 = vpop.f32.mrf.mxu0  ;;  %v1274_v28 = vadd.f32 %v3661_v23, %v1235_v48  ;;  %v1305_v6 = vpop.f32.mrf.mxu1 }
 0x124   :  { %v1697_v26 = vadd.f32 %v1274_v28, %v3598_v8  ;;  %1528 = vmatmul.bf16.vlgmr.msrb.gmra.mxu3 %v2800_v32 }
 0x125   :  { %1577 = vmatmul.bf16.gmra.mxu0 %v3006_v3  ;;  %1470 = vmatmul.bf16.gmra.mxu1 %v3272_v19 }
 0x126   :  { %1509 = vmatmul.bf16.gmra.mxu2 %v3000_v0  ;;  %1733 = vst [vmem:[#allocation2 + $0xa8] sm:$0xff] %v1697_v26  ;;  %1638 = vmatpush.bf16.msrb.mxu0 %v3518_v12 }
 0x127   :  { %v1237_v23 = vpop.f32.mrf.mxu3 }
 0x128   :  { %v1238_v31 = vadd.f32 %v1237_v23, %v1199_v24 }
 0x129   :  { %v1344_v55 = vpop.f32.mrf.mxu2 }
 0x12a   :  { %v3779_v11 = vadd.f32 %v1344_v55, %v1305_v6  ;;  %v3781_v22 = vpop.f32.mrf.mxu0  ;;  %v1277_v32 = vadd.f32 %v3685_v17, %v1238_v31  ;;  %v1307_v3 = vpop.f32.mrf.mxu1  ;;  %1639 = vmatpush.bf16.msrb.mxu0 %v3559_v52 }
 0x12c   :  { %v1700_v0 = vadd.f32 %v1277_v32, %v3598_v8 }
 0x12e   :  { %1736 = vst [vmem:[#allocation2 + $0xc0] sm:$0xff] %v1700_v0  ;;  %1640 = vmatpush.bf16.msrb.mxu0 %v3615_v57 }
 0x12f   :  { %v1239_v27 = vpop.f32.mrf.mxu3 }
 0x130   :  { %v1240_v12 = vadd.f32 %v1239_v27, %v1201_v34  ;;  %v3988_v34 = vld [vmem:[#allocation7_spill] sm:$0xff]  ;;  %v3989_v27 = vld [vmem:[#allocation6_spill] sm:$0xff] }
 0x131   :  { %v1346_v18 = vpop.f32.mrf.mxu2 }
 0x132   :  { %v3789_v61 = vadd.f32 %v1346_v18, %v1307_v3  ;;  %v3791_v36 = vpop.f32.mrf.mxu0  ;;  %v1279_v17 = vadd.f32 %v3711_v60, %v1240_v12  ;;  %v1310_v58 = vpop.f32.mrf.mxu1  ;;  %1641 = vmatpush.bf16.msrb.mxu0 %v3651_v42  ;;  %v3990_v18 = vld [vmem:[#allocation10_spill] sm:$0xff] }
 0x134   :  { %v1703_v52 = vadd.f32 %v1279_v17, %v3598_v8  ;;  %1533 = vmatmul.bf16.gmra.mxu3 %v2914_v21 }
 0x135   :  { %1582 = vmatmul.bf16.gmra.mxu0 %v3078_v41  ;;  %1475 = vmatmul.bf16.gmra.mxu1 %v3310_v49 }
 0x136   :  { %1514 = vmatmul.bf16.gmra.mxu2 %v3072_v38  ;;  %1739 = vst [vmem:[#allocation2 + $0xd8] sm:$0xff] %v1703_v52  ;;  %1642 = vmatpush.bf16.msrb.mxu0 %v3701_v25 }
 0x137   :  { %v1242_v57 = vpop.f32.mrf.mxu3 }
 0x138   :  { %v1243_v46 = vadd.f32 %v1242_v57, %v1204_v10 }
 0x139   :  { %v1349_v60 = vpop.f32.mrf.mxu2 }
 0x13a   :  { %v3803_v42 = vadd.f32 %v1349_v60, %v1310_v58  ;;  %v3805_v15 = vpop.f32.mrf.mxu0  ;;  %v1282_v21 = vadd.f32 %v3728_v4, %v1243_v46  ;;  %v1312_v41 = vpop.f32.mrf.mxu1  ;;  %1643 = vmatpush.bf16.msrb.mxu0 %v3724_v50 }
 0x13c   :  { %v1706_v38 = vadd.f32 %v1282_v21, %v3598_v8 }
 0x13e   :  { %1742 = vst [vmem:[#allocation2 + $0xf0] sm:$0xff] %v1706_v38  ;;  %1644 = vmatpush.bf16.msrb.mxu0 %v2281_v16 }
 0x13f   :  { %v1244_v9 = vpop.f32.mrf.mxu3 }
 0x140   :  { %v1245_v25 = vadd.f32 %v1244_v9, %v1206_v1  ;;  %v3991_v9 = vld [vmem:[#allocation8_spill] sm:$0xff] }
 0x141   :  { %v1351_v14 = vpop.f32.mrf.mxu2 }
 0x142   :  { %v3812_v54 = vadd.f32 %v1351_v14, %v1312_v41  ;;  %v3814_v35 = vpop.f32.mrf.mxu0  ;;  %v1284_v7 = vadd.f32 %v3747_v56, %v1245_v25  ;;  %v1315_v4 = vpop.f32.mrf.mxu1  ;;  %v3992_v25 = vld [vmem:[#allocation5_spill] sm:$0xff]  ;;  %v3993_v14 = vld [vmem:[#allocation11_spill] sm:$0xff] }
 0x144   :  { %v1709_v48 = vadd.f32 %v1284_v7, %v3598_v8  ;;  %1538 = vmatmul.bf16.gmra.mxu3 %v3004_v2 }
 0x145   :  { %1587 = vmatmul.bf16.gmra.mxu0 %v3138_v5  ;;  %1611 = vmatmul.bf16.vlgmr.msrb.gmra.mxu1 %v3204_v44 }
 0x146   :  { %1650 = vmatmul.bf16.vlgmr.msrb.gmra.mxu2 %v3074_v39  ;;  %1745 = vst [vmem:[#allocation2 + $0x108] sm:$0xff] %v1709_v48  ;;  %v3987_v39 = vld [vmem:[#allocation9_spill] sm:$0xff] }
 0x147   :  { %v1373_v62 = vpop.f32.mrf.mxu3 }
 0x148   :  { %v1374_v23 = vadd.f32 %v1373_v62, %v3709_v53 }
 0x149   :  { %v1354_v30 = vpop.f32.mrf.mxu2 }
 0x14a   :  { %v3822_v50 = vadd.f32 %v1354_v30, %v1315_v4  ;;  %v3824_v16 = vpop.f32.mrf.mxu0  ;;  %v1317_v20 = vpop.f32.mrf.mxu1 }
 0x14f   :  { %v1375_v56 = vpop.f32.mrf.mxu3 }
 0x150   :  { %v1376_v12 = vadd.f32 %v1375_v56, %v3726_v13 }
 0x151   :  { %v1356_v29 = vpop.f32.mrf.mxu2 }
 0x152   :  { %v3826_v28 = vadd.f32 %v1356_v29, %v1317_v20  ;;  %v3828_v8 = vpop.f32.mrf.mxu0  ;;  %v1320_v2 = vpop.f32.mrf.mxu1 }
 0x154   :  { %1543 = vmatmul.bf16.gmra.mxu3 %v3076_v40 }
 0x155   :  { %1592 = vmatmul.bf16.gmra.mxu0 %v3210_v47  ;;  %1616 = vmatmul.bf16.gmra.mxu1 %v3987_v39  ;;  %v3844_v47 = vperm.slane %v3585_v37, 1 }
 0x156   :  { %1655 = vmatmul.bf16.gmra.mxu2 %v3134_v63  ;;  %v1413_v63 = vadd.f32 %v3767_v33, %v1374_v23  ;;  %v1415_v33 = vadd.f32 %v3781_v22, %v1376_v12 }
 0x157   :  { %v1378_v5 = vpop.f32.mrf.mxu3 }
 0x158   :  { %v1379_v46 = vadd.f32 %v1378_v5, %v3745_v43 }
 0x159   :  { %v1359_v44 = vpop.f32.mrf.mxu2 }
 0x15a   :  { %v3834_v6 = vadd.f32 %v1359_v44, %v1320_v2  ;;  %v3836_v26 = vpop.f32.mrf.mxu0  ;;  %v1322_v24 = vpop.f32.mrf.mxu1 }
 0x15f   :  { %v1380_v31 = vpop.f32.mrf.mxu3 }
 0x160   :  { %v1381_v22 = vadd.f32 %v1380_v31, %v3765_v51 }
 0x161   :  { %v1361_v55 = vpop.f32.mrf.mxu2 }
 0x162   :  { %v3839_v32 = vadd.f32 %v1361_v55, %v1322_v24  ;;  %v3841_v40 = vpop.f32.mrf.mxu0  ;;  %v1451_v3 = vpop.f32.mrf.mxu1 }
 0x163   :  { %v1452_v0 = vadd.f32 %v1451_v3, %v1413_v63 }
 0x164   :  { %1548 = vmatmul.bf16.gmra.mxu3 %v3988_v34 }
 0x165   :  { %1606 = vmatmul.bf16.vlgmr.msra.gmra.mxu0 %v3989_v27  ;;  %v1677_v53 = vadd.f32 %v1452_v0, %v3844_v47  ;;  %1621 = vmatmul.bf16.gmra.mxu1 %v3990_v18 }
 0x166   :  { %1660 = vmatmul.bf16.gmra.mxu2 %v3206_v45  ;;  %v1418_v45 = vadd.f32 %v3791_v36, %v1379_v46  ;;  %v1420_v36 = vadd.f32 %v3805_v15, %v1381_v22 }
 0x167   :  { %1713 = vst [vmem:[#allocation2 + $0x8] sm:$0xff] %v1677_v53  ;;  %v1383_v17 = vpop.f32.mrf.mxu3 }
 0x168   :  { %v1384_v20 = vadd.f32 %v1383_v17, %v3779_v11 }
 0x169   :  { %v3853_v58 = vpop.f32.mrf.mxu2 }
 0x16a   :  { %v3855_v52 = vpop.f32.mrf.mxu0  ;;  %v1453_v10 = vpop.f32.mrf.mxu1 }
 0x16b   :  { %v1454_v57 = vadd.f32 %v1453_v10, %v1415_v33 }
 0x16d   :  { %v1680_v13 = vadd.f32 %v1454_v57, %v3844_v47 }
 0x16f   :  { %1716 = vst [vmem:[#allocation2 + $0x20] sm:$0xff] %v1680_v13  ;;  %v1385_v60 = vpop.f32.mrf.mxu3 }
 0x170   :  { %v1386_v44 = vadd.f32 %v1385_v60, %v3789_v61 }
 0x171   :  { %v3860_v21 = vpop.f32.mrf.mxu2 }
 0x172   :  { %v3862_v41 = vpop.f32.mrf.mxu0  ;;  %v1456_v38 = vpop.f32.mrf.mxu1  ;;  %v1425_v23 = vadd.f32 %v3824_v16, %v1386_v44 }
 0x173   :  { %v1457_v1 = vadd.f32 %v1456_v38, %v1418_v45 }
 0x174   :  { %1553 = vmatmul.bf16.gmra.mxu3 %v3991_v9 }
 0x175   :  { %1645 = vmatmul.bf16.vlgmr.msrb.gmra.mxu0 %v3992_v25  ;;  %v1683_v43 = vadd.f32 %v1457_v1, %v3844_v47  ;;  %1626 = vmatmul.bf16.gmra.mxu1 %v3993_v14 }
 0x176   :  { %1665 = vmatmul.bf16.gmra.mxu2 %v3272_v19  ;;  %v1423_v19 = vadd.f32 %v3814_v35, %v1384_v20 }
 0x177   :  { %1719 = vst [vmem:[#allocation2 + $0x38] sm:$0xff] %v1683_v43  ;;  %v1388_v7 = vpop.f32.mrf.mxu3 }
 0x178   :  { %v1389_v63 = vadd.f32 %v1388_v7, %v3803_v42 }
 0x179   :  { %v3871_v4 = vpop.f32.mrf.mxu2 }
 0x17a   :  { %v3873_v48 = vpop.f32.mrf.mxu0  ;;  %v1458_v62 = vpop.f32.mrf.mxu1 }
 0x17b   :  { %v1459_v30 = vadd.f32 %v1458_v62, %v1420_v36 }
 0x17d   :  { %v1686_v51 = vadd.f32 %v1459_v30, %v3844_v47 }
 0x17f   :  { %1722 = vst [vmem:[#allocation2 + $0x50] sm:$0xff] %v1686_v51  ;;  %v1390_v56 = vpop.f32.mrf.mxu3 }
 0x180   :  { %v1391_v12 = vadd.f32 %v1390_v56, %v3812_v54 }
 0x181   :  { %v3878_v29 = vpop.f32.mrf.mxu2 }
 0x182   :  { %v1568_v2 = vpop.f32.mrf.mxu0  ;;  %v1461_v39 = vpop.f32.mrf.mxu1  ;;  %v1430_v42 = vadd.f32 %v3836_v26, %v1391_v12 }
 0x183   :  { %v1462_v5 = vadd.f32 %v1461_v39, %v1423_v19 }
 0x185   :  { %v1689_v24 = vadd.f32 %v1462_v5, %v3844_v47  ;;  %1631 = vmatmul.bf16.gmra.mxu1 %v3402_v59  ;;  %v1428_v59 = vadd.f32 %v3828_v8, %v1389_v63 }
 0x186   :  { %1670 = vmatmul.bf16.gmra.mxu2 %v3310_v49 }
 0x187   :  { %1725 = vst [vmem:[#allocation2 + $0x68] sm:$0xff] %v1689_v24  ;;  %v1393_v11 = vpop.f32.mrf.mxu3 }
 0x188   :  { %v1394_v57 = vadd.f32 %v1393_v11, %v3822_v50 }
 0x189   :  { %v3885_v15 = vpop.f32.mrf.mxu2 }
 0x18a   :  { %v1570_v31 = vpop.f32.mrf.mxu0  ;;  %v1463_v55 = vpop.f32.mrf.mxu1  ;;  %v1433_v54 = vadd.f32 %v3841_v40, %v1394_v57 }
 0x18b   :  { %v1464_v35 = vadd.f32 %v1463_v55, %v1425_v23 }
 0x18d   :  { %v1692_v3 = vadd.f32 %v1464_v35, %v3844_v47 }
 0x18f   :  { %1728 = vst [vmem:[#allocation2 + $0x80] sm:$0xff] %v1692_v3  ;;  %v1395_v61 = vpop.f32.mrf.mxu3 }
 0x190   :  { %v1396_v1 = vadd.f32 %v1395_v61, %v3826_v28 }
 0x191   :  { %v3890_v0 = vpop.f32.mrf.mxu2 }
 0x192   :  { %v1573_v49 = vpop.f32.mrf.mxu0  ;;  %v1466_v34 = vpop.f32.mrf.mxu1  ;;  %v1435_v22 = vadd.f32 %v3855_v52, %v1396_v1 }
 0x193   :  { %v1467_v27 = vadd.f32 %v1466_v34, %v1428_v59  ;;  %v3931_v59 = vperm.slane %v3585_v37, 2 }
 0x195   :  { %v1695_v16 = vadd.f32 %v1467_v27, %v3844_v47 }
 0x197   :  { %1731 = vst [vmem:[#allocation2 + $0x98] sm:$0xff] %v1695_v16  ;;  %v1398_v53 = vpop.f32.mrf.mxu3 }
 0x198   :  { %v1399_v36 = vadd.f32 %v1398_v53, %v3834_v6 }
 0x199   :  { %v3895_v18 = vpop.f32.mrf.mxu2 }
 0x19a   :  { %v1575_v17 = vpop.f32.mrf.mxu0  ;;  %v1468_v33 = vpop.f32.mrf.mxu1  ;;  %v1438_v51 = vadd.f32 %v3862_v41, %v1399_v36 }
 0x19b   :  { %v1469_v10 = vadd.f32 %v1468_v33, %v1430_v42 }
 0x19d   :  { %v1698_v8 = vadd.f32 %v1469_v10, %v3844_v47 }
 0x19f   :  { %1734 = vst [vmem:[#allocation2 + $0xb0] sm:$0xff] %v1698_v8  ;;  %v1400_v46 = vpop.f32.mrf.mxu3 }
 0x1a1   :  { %v3900_v13 = vpop.f32.mrf.mxu2 }
 0x1a2   :  { %v1578_v60 = vpop.f32.mrf.mxu0  ;;  %v1471_v45 = vpop.f32.mrf.mxu1 }
 0x1a3   :  { %v1472_v38 = vadd.f32 %v1471_v45, %v1433_v54 }
 0x1a5   :  { %v1701_v26 = vadd.f32 %v1472_v38, %v3844_v47 }
 0x1a7   :  { %1737 = vst [vmem:[#allocation2 + $0xc8] sm:$0xff] %v1701_v26  ;;  %v1529_v9 = vpop.f32.mrf.mxu3 }
 0x1a8   :  { %v1530_v50 = vadd.f32 %v1529_v9, %v3853_v58 }
 0x1a9   :  { %v3905_v25 = vpop.f32.mrf.mxu2 }
 0x1aa   :  { %v1580_v43 = vpop.f32.mrf.mxu0  ;;  %v1473_v14 = vpop.f32.mrf.mxu1  ;;  %v3909_v7 = vadd.f32 %v1568_v2, %v1530_v50  ;;  %v1401_v2 = vadd.f32 %v1400_v46, %v3839_v32 }
 0x1ab   :  { %v1474_v40 = vadd.f32 %v1473_v14, %v1435_v22 }
 0x1ac   :  { %v1440_v44 = vadd.f32 %v3873_v48, %v1401_v2 }
 0x1ad   :  { %v1704_v62 = vadd.f32 %v1474_v40, %v3844_v47 }
 0x1af   :  { %1740 = vst [vmem:[#allocation2 + $0xe0] sm:$0xff] %v1704_v62  ;;  %v1531_v28 = vpop.f32.mrf.mxu3 }
 0x1b0   :  { %v1532_v20 = vadd.f32 %v1531_v28, %v3860_v21 }
 0x1b1   :  { %v3913_v30 = vpop.f32.mrf.mxu2 }
 0x1b2   :  { %v1583_v58 = vpop.f32.mrf.mxu0  ;;  %v1476_v56 = vpop.f32.mrf.mxu1  ;;  %v3917_v52 = vadd.f32 %v1570_v31, %v1532_v20 }
 0x1b3   :  { %v1477_v19 = vadd.f32 %v1476_v56, %v1438_v51 }
 0x1b5   :  { %v1707_v39 = vadd.f32 %v1477_v19, %v3844_v47 }
 0x1b7   :  { %1743 = vst [vmem:[#allocation2 + $0xf8] sm:$0xff] %v1707_v39  ;;  %v1534_v6 = vpop.f32.mrf.mxu3 }
 0x1b8   :  { %v1535_v55 = vadd.f32 %v1534_v6, %v3871_v4 }
 0x1b9   :  { %v3921_v5 = vpop.f32.mrf.mxu2 }
 0x1ba   :  { %v1585_v24 = vpop.f32.mrf.mxu0  ;;  %v1478_v11 = vpop.f32.mrf.mxu1  ;;  %v1574_v63 = vadd.f32 %v1573_v49, %v1535_v55 }
 0x1bb   :  { %v1479_v21 = vadd.f32 %v1478_v11, %v1440_v44 }
 0x1bd   :  { %v1710_v41 = vadd.f32 %v1479_v21, %v3844_v47 }
 0x1bf   :  { %1746 = vst [vmem:[#allocation2 + $0x110] sm:$0xff] %v1710_v41  ;;  %v1536_v23 = vpop.f32.mrf.mxu3 }
 0x1c0   :  { %v1537_v34 = vadd.f32 %v1536_v23, %v3878_v29 }
 0x1c1   :  { %v3925_v31 = vpop.f32.mrf.mxu2 }
 0x1c2   :  { %v3928_v32 = vpop.f32.mrf.mxu0  ;;  %v1612_v35 = vpop.f32.mrf.mxu1  ;;  %v1576_v4 = vadd.f32 %v1575_v17, %v1537_v34 }
 0x1c3   :  { %v1613_v3 = vadd.f32 %v1612_v35, %v1574_v63 }
 0x1c7   :  { %v1539_v61 = vpop.f32.mrf.mxu3 }
 0x1c8   :  { %v1540_v49 = vadd.f32 %v1539_v61, %v3885_v15 }
 0x1c9   :  { %v1651_v48 = vpop.f32.mrf.mxu2 }
 0x1ca   :  { %v1652_v27 = vadd.f32 %v1651_v48, %v1613_v3  ;;  %v3934_v47 = vpop.f32.mrf.mxu0  ;;  %v1614_v12 = vpop.f32.mrf.mxu1  ;;  %v1579_v29 = vadd.f32 %v1578_v60, %v1540_v49 }
 0x1cb   :  { %v1615_v53 = vadd.f32 %v1614_v12, %v1576_v4 }
 0x1cc   :  { %v1684_v16 = vadd.f32 %v1652_v27, %v3931_v59 }
 0x1ce   :  { %1720 = vst [vmem:[#allocation2 + $0x40] sm:$0xff] %v1684_v16 }
 0x1cf   :  { %v1541_v42 = vpop.f32.mrf.mxu3 }
 0x1d0   :  { %v1542_v38 = vadd.f32 %v1541_v42, %v3890_v0 }
 0x1d1   :  { %v1653_v33 = vpop.f32.mrf.mxu2 }
 0x1d2   :  { %v1654_v10 = vadd.f32 %v1653_v33, %v1615_v53  ;;  %v3938_v57 = vpop.f32.mrf.mxu0  ;;  %v1617_v37 = vpop.f32.mrf.mxu1  ;;  %v1581_v15 = vadd.f32 %v1580_v43, %v1542_v38 }
 0x1d3   :  { %v1618_v46 = vadd.f32 %v1617_v37, %v1579_v29 }
 0x1d4   :  { %v1687_v8 = vadd.f32 %v1654_v10, %v3931_v59 }
 0x1d6   :  { %1723 = vst [vmem:[#allocation2 + $0x58] sm:$0xff] %v1687_v8 }
 0x1d7   :  { %v1544_v54 = vpop.f32.mrf.mxu3 }
 0x1d8   :  { %v1545_v40 = vadd.f32 %v1544_v54, %v3895_v18 }
 0x1d9   :  { %v1656_v45 = vpop.f32.mrf.mxu2 }
 0x1da   :  { %v1657_v1 = vadd.f32 %v1656_v45, %v1618_v46  ;;  %v3942_v17 = vpop.f32.mrf.mxu0  ;;  %v1619_v26 = vpop.f32.mrf.mxu1  ;;  %v1584_v0 = vadd.f32 %v1583_v58, %v1545_v40 }
 0x1db   :  { %v1620_v50 = vadd.f32 %v1619_v26, %v1581_v15 }
 0x1dc   :  { %v1690_v9 = vadd.f32 %v1657_v1, %v3931_v59 }
 0x1de   :  { %1726 = vst [vmem:[#allocation2 + $0x70] sm:$0xff] %v1690_v9 }
 0x1df   :  { %v1546_v22 = vpop.f32.mrf.mxu3 }
 0x1e0   :  { %v1547_v19 = vadd.f32 %v1546_v22, %v3900_v13 }
 0x1e1   :  { %v1658_v14 = vpop.f32.mrf.mxu2 }
 0x1e2   :  { %v1659_v36 = vadd.f32 %v1658_v14, %v1620_v50  ;;  %v1607_v60 = vpop.f32.mrf.mxu0  ;;  %v1622_v62 = vpop.f32.mrf.mxu1  ;;  %v1586_v44 = vadd.f32 %v1585_v24, %v1547_v19 }
 0x1e3   :  { %v1623_v20 = vadd.f32 %v1622_v62, %v1584_v0  ;;  %v1608_v11 = vadd.f32 %v1607_v60, %v3909_v7 }
 0x1e4   :  { %v1693_v28 = vadd.f32 %v1659_v36, %v3931_v59 }
 0x1e6   :  { %1729 = vst [vmem:[#allocation2 + $0x88] sm:$0xff] %v1693_v28 }
 0x1e7   :  { %v1549_v51 = vpop.f32.mrf.mxu3 }
 0x1e8   :  { %v1550_v41 = vadd.f32 %v1549_v51, %v3905_v25 }
 0x1e9   :  { %v1661_v56 = vpop.f32.mrf.mxu2 }
 0x1ea   :  { %v1662_v2 = vadd.f32 %v1661_v56, %v1623_v20  ;;  %v1609_v39 = vpop.f32.mrf.mxu0  ;;  %v1624_v43 = vpop.f32.mrf.mxu1  ;;  %v1589_v61 = vadd.f32 %v3928_v32, %v1550_v41 }
 0x1eb   :  { %v1625_v18 = vadd.f32 %v1624_v43, %v1586_v44  ;;  %v1610_v48 = vadd.f32 %v1609_v39, %v3917_v52 }
 0x1ec   :  { %v1696_v6 = vadd.f32 %v1662_v2, %v3931_v59 }
 0x1ee   :  { %1732 = vst [vmem:[#allocation2 + $0xa0] sm:$0xff] %v1696_v6 }
 0x1ef   :  { %v1551_v55 = vpop.f32.mrf.mxu3 }
 0x1f0   :  { %v1552_v34 = vadd.f32 %v1551_v55, %v3913_v30 }
 0x1f1   :  { %v1663_v21 = vpop.f32.mrf.mxu2 }
 0x1f2   :  { %v1664_v23 = vadd.f32 %v1663_v21, %v1625_v18  ;;  %v1646_v58 = vpop.f32.mrf.mxu0  ;;  %v1627_v35 = vpop.f32.mrf.mxu1  ;;  %v1591_v33 = vadd.f32 %v3934_v47, %v1552_v34 }
 0x1f3   :  { %v1647_v63 = vadd.f32 %v1646_v58, %v1608_v11  ;;  %v1628_v24 = vadd.f32 %v1627_v35, %v1589_v61 }
 0x1f4   :  { %v1699_v13 = vadd.f32 %v1664_v23, %v3931_v59 }
 0x1f5   :  { %v1678_v3 = vadd.f32 %v1647_v63, %v3931_v59 }
 0x1f6   :  { %1735 = vst [vmem:[#allocation2 + $0xb8] sm:$0xff] %v1699_v13 }
 0x1f7   :  { %1714 = vst [vmem:[#allocation2 + $0x10] sm:$0xff] %v1678_v3  ;;  %v1554_v53 = vpop.f32.mrf.mxu3 }
 0x1f8   :  { %v1555_v52 = vadd.f32 %v1554_v53, %v3921_v5 }
 0x1f9   :  { %v1666_v7 = vpop.f32.mrf.mxu2 }
 0x1fa   :  { %v1667_v25 = vadd.f32 %v1666_v7, %v1628_v24  ;;  %v1648_v27 = vpop.f32.mrf.mxu0  ;;  %v1629_v12 = vpop.f32.mrf.mxu1  ;;  %v1594_v8 = vadd.f32 %v3938_v57, %v1555_v52 }
 0x1fb   :  { %v1649_v16 = vadd.f32 %v1648_v27, %v1610_v48  ;;  %v1630_v32 = vadd.f32 %v1629_v12, %v1591_v33 }
 0x1fc   :  { %v1702_v4 = vadd.f32 %v1667_v25, %v3931_v59 }
 0x1fd   :  { %v1681_v42 = vadd.f32 %v1649_v16, %v3931_v59 }
 0x1fe   :  { %1738 = vst [vmem:[#allocation2 + $0xd0] sm:$0xff] %v1702_v4 }
 0x1ff   :  { %1717 = vst [vmem:[#allocation2 + $0x28] sm:$0xff] %v1681_v42  ;;  %v1556_v29 = vpop.f32.mrf.mxu3 }
 0x200   :  { %v1557_v45 = vadd.f32 %v1556_v29, %v3925_v31 }
 0x201   :  { %v1668_v49 = vpop.f32.mrf.mxu2 }
 0x202   :  { %v1669_v10 = vadd.f32 %v1668_v49, %v1630_v32  ;;  %v1632_v37 = vpop.f32.mrf.mxu1  ;;  %v1596_v26 = vadd.f32 %v3942_v17, %v1557_v45 }
 0x203   :  { %v1633_v46 = vadd.f32 %v1632_v37, %v1594_v8 }
 0x204   :  { %v1705_v30 = vadd.f32 %v1669_v10, %v3931_v59 }
 0x206   :  { %1741 = vst [vmem:[#allocation2 + $0xe8] sm:$0xff] %v1705_v30 }
 0x209   :  { %v1671_v54 = vpop.f32.mrf.mxu2 }
 0x20a   :  { %v1672_v38 = vadd.f32 %v1671_v54, %v1633_v46  ;;  %v1634_v1 = vpop.f32.mrf.mxu1 }
 0x20b   :  { %v1635_v5 = vadd.f32 %v1634_v1, %v1596_v26 }
 0x20c   :  { %v1708_v47 = vadd.f32 %v1672_v38, %v3931_v59 }
 0x20e   :  { %1744 = vst [vmem:[#allocation2 + $0x100] sm:$0xff] %v1708_v47 }
 0x211   :  { %v1673_v57 = vpop.f32.mrf.mxu2 }
 0x212   :  { %v1674_v9 = vadd.f32 %v1673_v57, %v1635_v5 }
 0x214   :  { %v1711_v31 = vadd.f32 %v1674_v9, %v3931_v59 }
 0x216   :  { %1747 = vst [vmem:[#allocation2 + $0x118] sm:$0xff] %v1711_v31 }
 0x217   :  { %1760 = dma.vmem_to_hbm [thread:$0]  %s1753_s13, 4608, %s1755_s16, [#allocation3], %s2570_s17, %s2570_s17, %s2571_s18  }
 0x218   :  { %2567 = dma.done.wait [#allocation3], 4608  }
 0x219   :  { %2568 = vsyncadd [#allocation3], 4294962688 }
 0x21a   :  { %1765 = vsyncpa [#allocation3], 1 }

</bundles_post_ra>
